<compile_context>
chip_gen: v7x
topology: tpu7x:2x2x1
jax: 0.10.0
libtpu: 0.0.40
codegen_flags: <defaults>
</compile_context>

<pallas_src>
import functools
import math

import jax
import jax.numpy as jnp
from jax.experimental import pallas as pl
from jax.experimental.pallas import tpu as pltpu


def _round_up(n, m):
    return ((n + m - 1) // m) * m


def _ln_f32(x, g, b, eps):
    mu = jnp.mean(x, axis=-1, keepdims=True)
    xc = x - mu
    var = jnp.mean(xc * xc, axis=-1, keepdims=True)
    return xc * jax.lax.rsqrt(var + eps) * g + b


def _mm(a, b, compute_dtype):
    if compute_dtype is not None:
        a = a.astype(compute_dtype)
        b = b.astype(compute_dtype)
    return jnp.dot(a, b, preferred_element_type=jnp.float32)


# --------------------------------------------------------------------------- #
# Fused conv block: LayerNorm -> depthwise conv -> 1x1 conv + ReLU -> +residual
# --------------------------------------------------------------------------- #
def _conv_block_kernel(x_ref, lng_ref, lnb_ref, dww_ref, pww_ref, pwb_ref, o_ref,
                       hp_ref, *, ksize, eps, compute_dtype):
    L = x_ref.shape[1]
    pad = ksize // 2
    off = hp_ref.shape[0] - L - pad            # sublane-aligned start of live rows

    x = x_ref[0].astype(jnp.float32)           # (L, D); also the residual
    h = _ln_f32(x, lng_ref[...], lnb_ref[...], eps)

    # Zero-padded copy of h in VMEM scratch (replaces the old full-HBM jnp.pad).
    hp_ref[...] = jnp.zeros(hp_ref.shape, hp_ref.dtype)
    hp_ref[off:off + L, :] = h

    # Depthwise conv = K shifted multiply-accumulates (VPU), taps read the scratch
    # at static sublane offsets.
    base = off - pad
    acc = hp_ref[base:base + L, :] * dww_ref[0:1, :].astype(jnp.float32)
    for k in range(1, ksize):
        acc = acc + (hp_ref[base + k:base + k + L, :]
                     * dww_ref[k:k + 1, :].astype(jnp.float32))

    # Pointwise 1x1 conv (MXU) + bias + ReLU + residual, all in-kernel.
    y = _mm(acc, pww_ref[...], compute_dtype) + pwb_ref[...]
    y = jnp.maximum(y, 0.0)
    o_ref[0] = (y + x).astype(o_ref.dtype)


def conv_block(x, layer, *, eps=1e-6, compute_dtype=None):
    B, L, D = x.shape
    K = layer["dw_w"].shape[0]
    pad = K // 2
    off = _round_up(pad, 8)                    # aligned store offset inside the scratch
    return pl.pallas_call(
        functools.partial(_conv_block_kernel, ksize=K, eps=eps,
                          compute_dtype=compute_dtype),
        out_shape=jax.ShapeDtypeStruct((B, L, D), x.dtype),
        grid_spec=pltpu.PrefetchScalarGridSpec(
            num_scalar_prefetch=0,
            grid=(B,),
            in_specs=[
                pl.BlockSpec((1, L, D), lambda b: (b, 0, 0)),
                pl.BlockSpec((1, D), lambda b: (0, 0)),
                pl.BlockSpec((1, D), lambda b: (0, 0)),
                pl.BlockSpec((K, D), lambda b: (0, 0)),
                pl.BlockSpec((D, D), lambda b: (0, 0)),
                pl.BlockSpec((1, D), lambda b: (0, 0)),
            ],
            out_specs=pl.BlockSpec((1, L, D), lambda b: (b, 0, 0)),
            scratch_shapes=[pltpu.VMEM((off + L + pad, D), jnp.float32)],
        ),
        compiler_params=pltpu.CompilerParams(dimension_semantics=("parallel",)),
    )(x,
      layer["ln_g"].reshape(1, D).astype(jnp.float32),
      layer["ln_b"].reshape(1, D).astype(jnp.float32),
      layer["dw_w"].astype(jnp.float32),
      layer["pw_w"].astype(jnp.float32),
      layer["pw_b"].reshape(1, D).astype(jnp.float32))


# --------------------------------------------------------------------------- #
# Fused multi-head attention block:
#   LN1 -> fused QKV -> masked softmax attention -> +x -> LN2 -> out proj -> +res
# --------------------------------------------------------------------------- #
def _attn_block_kernel(x_ref, mask_ref, ln1g_ref, ln1b_ref, wqkv_ref, bqkv_ref,
                       ln2g_ref, ln2b_ref, wo_ref, bo_ref, o_ref,
                       *, num_heads, eps, compute_dtype):
    x = x_ref[0].astype(jnp.float32)                       # (L, D)
    L, D = x.shape
    H = num_heads
    dh = D // H
    scale = 1.0 / math.sqrt(dh)

    # LN1 + fused QKV projection (single (L,D)@(D,3D) MXU matmul, N=3D).
    h = _ln_f32(x, ln1g_ref[...], ln1b_ref[...], eps)
    qkv = _mm(h, wqkv_ref[...], compute_dtype) + bqkv_ref[...]   # (L, 3D) f32
    q = qkv[:, 0:D] * scale                 # fold 1/sqrt(dh) into q (L*D work, not L*L)
    k = qkv[:, D:2 * D]
    v = qkv[:, 2 * D:3 * D]

    # Additive key mask built in-kernel from the (1, L) mask row (torch mask_logits).
    bias = (1.0 - mask_ref[0].astype(jnp.float32)) * (-1e30)     # (1, L)

    # Per-head attention with lane-dense (L, D) operands: the head split is done with
    # a per-head column mask so score/context matmuls stay 128-lane wide and each
    # head's context lands directly in its output columns (no concat / transpose).
    col = jax.lax.broadcasted_iota(jnp.int32, (1, D), 1)
    ctx = jnp.zeros((L, D), jnp.float32)
    for hd in range(H):
        head_cols = jnp.logical_and(col >= hd * dh, col < (hd + 1) * dh)   # (1, D)
        qh = jnp.where(head_cols, q, 0.0)
        lhs = qh if compute_dtype is None else qh.astype(compute_dtype)
        rhs = k if compute_dtype is None else k.astype(compute_dtype)
        s = jax.lax.dot_general(lhs, rhs, (((1,), (1,)), ((), ())),
                                preferred_element_type=jnp.float32)        # (L, L)
        s = s + bias
        s = s - jnp.max(s, axis=-1, keepdims=True)
        p = jnp.exp(s)
        p = p * pl.reciprocal(jnp.sum(p, axis=-1, keepdims=True), approx=True)
        vh = jnp.where(head_cols, v, 0.0)
        ctx = ctx + _mm(p, vh, compute_dtype)

    residual = ctx + x
    o = _ln_f32(residual, ln2g_ref[...], ln2b_ref[...], eps)
    o = _mm(o, wo_ref[...], compute_dtype) + bo_ref[...]
    o_ref[0] = (o + residual).astype(o_ref.dtype)


def attention_block(p, x, mask, num_heads, *, eps=1e-6, compute_dtype=None):
    B, L, D = x.shape
    w_qkv = jnp.concatenate([p["q_w"], p["k_w"], p["v_w"]], axis=1).astype(jnp.float32)
    b_qkv = jnp.concatenate([p["q_b"], p["k_b"], p["v_b"]]).reshape(1, 3 * D).astype(jnp.float32)
    mask3 = mask.reshape(B, 1, L).astype(jnp.float32)
    return pl.pallas_call(
        functools.partial(_attn_block_kernel, num_heads=num_heads, eps=eps,
                          compute_dtype=compute_dtype),
        out_shape=jax.ShapeDtypeStruct((B, L, D), x.dtype),
        grid_spec=pltpu.PrefetchScalarGridSpec(
            num_scalar_prefetch=0,
            grid=(B,),
            in_specs=[
                pl.BlockSpec((1, L, D), lambda b: (b, 0, 0)),
                pl.BlockSpec((1, 1, L), lambda b: (b, 0, 0)),
                pl.BlockSpec((1, D), lambda b: (0, 0)),
                pl.BlockSpec((1, D), lambda b: (0, 0)),
                pl.BlockSpec((D, 3 * D), lambda b: (0, 0)),
                pl.BlockSpec((1, 3 * D), lambda b: (0, 0)),
                pl.BlockSpec((1, D), lambda b: (0, 0)),
                pl.BlockSpec((1, D), lambda b: (0, 0)),
                pl.BlockSpec((D, D), lambda b: (0, 0)),
                pl.BlockSpec((1, D), lambda b: (0, 0)),
            ],
            out_specs=pl.BlockSpec((1, L, D), lambda b: (b, 0, 0)),
        ),
        compiler_params=pltpu.CompilerParams(dimension_semantics=("parallel",)),
    )(x, mask3,
      p["ln1_g"].reshape(1, D).astype(jnp.float32),
      p["ln1_b"].reshape(1, D).astype(jnp.float32),
      w_qkv, b_qkv,
      p["ln2_g"].reshape(1, D).astype(jnp.float32),
      p["ln2_b"].reshape(1, D).astype(jnp.float32),
      p["o_w"].astype(jnp.float32),
      p["o_b"].reshape(1, D).astype(jnp.float32))


# --------------------------------------------------------------------------- #
# Generic fused linear (used only for the tiny FiLM generator):  y = x @ w + b
# --------------------------------------------------------------------------- #
def _linear_kernel(x_ref, w_ref, b_ref, o_ref, *, activation):
    y = jnp.dot(x_ref[...], w_ref[...], preferred_element_type=jnp.float32) + b_ref[...]
    if activation == "relu":
        y = jnp.maximum(y, 0.0)
    o_ref[...] = y.astype(o_ref.dtype)


def linear(x, w, b, activation=None, *, tm=512):
    orig_shape = x.shape
    Cin, Cout = w.shape
    out_dtype = x.dtype
    M = math.prod(orig_shape[:-1])
    x2 = x.reshape(M, Cin)

    Cin_p, Cout_p = _round_up(Cin, 128), _round_up(Cout, 128)
    if Cin_p != Cin:
        x2 = jnp.pad(x2, ((0, 0), (0, Cin_p - Cin)))
        w = jnp.pad(w, ((0, Cin_p - Cin), (0, 0)))
    if Cout_p != Cout:
        w = jnp.pad(w, ((0, 0), (0, Cout_p - Cout)))
        b = jnp.pad(b, (0, Cout_p - Cout))

    tm_eff = min(tm, _round_up(M, 8))
    M_p = _round_up(M, tm_eff)
    if M_p != M:
        x2 = jnp.pad(x2, ((0, M_p - M), (0, 0)))

    y = pl.pallas_call(
        functools.partial(_linear_kernel, activation=activation),
        out_shape=jax.ShapeDtypeStruct((M_p, Cout_p), out_dtype),
        grid_spec=pltpu.PrefetchScalarGridSpec(
            num_scalar_prefetch=0,
            grid=(pl.cdiv(M_p, tm_eff),),
            in_specs=[
                pl.BlockSpec((tm_eff, Cin_p), lambda i: (i, 0)),
                pl.BlockSpec((Cin_p, Cout_p), lambda i: (0, 0)),
                pl.BlockSpec((1, Cout_p), lambda i: (0, 0)),
            ],
            out_specs=pl.BlockSpec((tm_eff, Cout_p), lambda i: (i, 0)),
        ),
        compiler_params=pltpu.CompilerParams(dimension_semantics=("parallel",)),
    )(x2, w.astype(out_dtype), b.reshape(1, Cout_p).astype(jnp.float32))
    return y[:M, :Cout].reshape(orig_shape[:-1] + (Cout,))


# --------------------------------------------------------------------------- #
# FeatureEncoder forward (Pallas-backed)
# --------------------------------------------------------------------------- #
def _film(video, query, w, b):
    # TODO(synk): nn.Dropout is identity here (module default drop_rate=0.0).
    pooled = jnp.mean(query, axis=1)                 # 'mean' pooling
    gb = linear(pooled, w, b)                        # (B, 2D), N=2D fills the wide MXU
    D = video.shape[-1]
    gamma, beta = gb[:, :D], gb[:, D:]
    return gamma[:, None, :] * video + beta[:, None, :]


@functools.partial(jax.jit, static_argnames=("num_heads", "film_mode", "compute_dtype"))
def feature_encoder_forward(params, x, mask, query_feats, *, num_heads,
                            film_mode="off", compute_dtype=None):
    B, L, D = x.shape
    feats = x + params["pos_emb"][None, :L, :]       # positional embedding (arange rows)
    if film_mode in ("inside_encoder:after_pos", "inside_encoder:multi"):
        feats = _film(feats, query_feats, params["film"]["pos_w"], params["film"]["pos_b"])

    out = feats
    for layer in params["conv_layers"]:
        out = conv_block(out, layer, compute_dtype=compute_dtype)

    if film_mode in ("inside_encoder:after_conv", "inside_encoder:multi"):
        out = _film(out, query_feats, params["film"]["conv_w"], params["film"]["conv_b"])

    out = attention_block(params["attn"], out, mask, num_heads, compute_dtype=compute_dtype)

    if film_mode in ("inside_encoder:after_attn", "inside_encoder:multi"):
        out = _film(out, query_feats, params["film"]["attn_w"], params["film"]["attn_b"])
    return out


# --------------------------------------------------------------------------- #
# Pure-JAX reference (mirrors the PyTorch module) + test harness
# --------------------------------------------------------------------------- #
def _reference_forward(params, x, mask, query_feats, *, num_heads, film_mode):
    HI = jax.lax.Precision.HIGHEST
    B, L, D = x.shape

    def ln(t, g, b, eps=1e-6):
        mu = t.mean(-1, keepdims=True)
        var = ((t - mu) ** 2).mean(-1, keepdims=True)
        return (t - mu) / jnp.sqrt(var + eps) * g + b

    def film(video, query, w, b):
        pooled = query.mean(axis=1)
        gb = jnp.einsum("bd,do->bo", pooled, w, precision=HI) + b
        return gb[:, None, :D] * video + gb[:, None, D:]

    feats = x + params["pos_emb"][None, :L, :]
    if film_mode in ("inside_encoder:after_pos", "inside_encoder:multi"):
        feats = film(feats, query_feats, params["film"]["pos_w"], params["film"]["pos_b"])
    out = feats
    for layer in params["conv_layers"]:
        residual = out
        h = ln(out, layer["ln_g"], layer["ln_b"])
        K = layer["dw_w"].shape[0]
        pad = K // 2
        hp = jnp.pad(h, ((0, 0), (pad, pad), (0, 0)))
        dw = sum(hp[:, k:k + L, :] * layer["dw_w"][k] for k in range(K))
        pw = jnp.einsum("blc,co->blo", dw, layer["pw_w"], precision=HI) + layer["pw_b"]
        out = jnp.maximum(pw, 0.0) + residual
    if film_mode in ("inside_encoder:after_conv", "inside_encoder:multi"):
        out = film(out, query_feats, params["film"]["conv_w"], params["film"]["conv_b"])
    p = params["attn"]
    h = ln(out, p["ln1_g"], p["ln1_b"])
    q = jnp.einsum("blc,co->blo", h, p["q_w"], precision=HI) + p["q_b"]
    k = jnp.einsum("blc,co->blo", h, p["k_w"], precision=HI) + p["k_b"]
    v = jnp.einsum("blc,co->blo", h, p["v_w"], precision=HI) + p["v_b"]
    H = num_heads
    dh = D // H
    split = lambda t: t.reshape(B, L, H, dh).transpose(0, 2, 1, 3)
    qh, kh, vh = split(q), split(k), split(v)
    scores = jnp.einsum("bhqd,bhkd->bhqk", qh, kh, precision=HI) / math.sqrt(dh)
    scores = scores + (1.0 - mask)[:, None, None, :] * (-1e30)
    probs = jax.nn.softmax(scores, axis=-1)
    ctx = jnp.einsum("bhqk,bhkd->bhqd", probs, vh, precision=HI)
    ctx = ctx.transpose(0, 2, 1, 3).reshape(B, L, D)
    residual = ctx + out
    o = ln(residual, p["ln2_g"], p["ln2_b"])
    o = jnp.einsum("blc,co->blo", o, p["o_w"], precision=HI) + p["o_b"]
    o = o + residual
    if film_mode in ("inside_encoder:after_attn", "inside_encoder:multi"):
        o = film(o, query_feats, params["film"]["attn_w"], params["film"]["attn_b"])
    return o


def _init_params(key, dim, max_pos_len, ksize, num_layers):
    keys = iter(jax.random.split(key, 40))

    def nrm(shape, scale):
        return scale * jax.random.normal(next(keys), shape, dtype=jnp.float32)

    return {
        "pos_emb": nrm((max_pos_len, dim), 0.1),
        "conv_layers": [
            {
                "ln_g": 1.0 + nrm((dim,), 0.05),
                "ln_b": nrm((dim,), 0.05),
                "dw_w": nrm((ksize, dim), 0.1),      # torch (dim, 1, k) -> (k, dim)
                "pw_w": nrm((dim, dim), 0.05),       # torch (out, in, 1) -> (in, out)
                "pw_b": nrm((dim,), 0.05),
            }
            for _ in range(num_layers)
        ],
        "attn": {
            "ln1_g": 1.0 + nrm((dim,), 0.05), "ln1_b": nrm((dim,), 0.05),
            "q_w": nrm((dim, dim), 0.05), "q_b": nrm((dim,), 0.05),
            "k_w": nrm((dim, dim), 0.05), "k_b": nrm((dim,), 0.05),
            "v_w": nrm((dim, dim), 0.05), "v_b": nrm((dim,), 0.05),
            "ln2_g": 1.0 + nrm((dim,), 0.05), "ln2_b": nrm((dim,), 0.05),
            "o_w": nrm((dim, dim), 0.05), "o_b": nrm((dim,), 0.05),
        },
        "film": {
            "pos_w": nrm((dim, 2 * dim), 0.05), "pos_b": nrm((2 * dim,), 0.05),
            "conv_w": nrm((dim, 2 * dim), 0.05), "conv_b": nrm((2 * dim,), 0.05),
            "attn_w": nrm((dim, 2 * dim), 0.05), "attn_b": nrm((2 * dim,), 0.05),
        },
    }


if __name__ == "__main__":
    B, L, LQ, D, H = 2, 16, 8, 128, 4
    MAX_POS, KSIZE, NUM_LAYERS = 32, 7, 4

    k_param, k_x, k_q = jax.random.split(jax.random.PRNGKey(0), 3)
    params = _init_params(k_param, D, MAX_POS, KSIZE, NUM_LAYERS)
    x = 0.5 * jax.random.normal(k_x, (B, L, D), dtype=jnp.float32)
    query_feats = 0.5 * jax.random.normal(k_q, (B, LQ, D), dtype=jnp.float32)
    lengths = jnp.array([L, 11], dtype=jnp.int32)
    mask = (jnp.arange(L)[None, :] < lengths[:, None]).astype(jnp.float32)

    for mode in ("off", "inside_encoder:multi"):
        out = feature_encoder_forward(params, x, mask, query_feats,
                                      num_heads=H, film_mode=mode)
        out = jax.block_until_ready(out)
        ref = _reference_forward(params, x, mask, query_feats,
                                 num_heads=H, film_mode=mode)
        assert out.shape == (B, L, D)
        err = float(jnp.max(jnp.abs(out - ref)))
        assert jnp.allclose(out, ref, rtol=2e-2, atol=2e-2), f"mode={mode} max_abs_err={err}"

    print("KERNEL_OK")
</pallas_src>

<mosaic_0001>
module attributes {stable_mosaic.version = 11 : i64} {
  func.func @_conv_block_kernel(%arg0: i32, %arg1: memref<1x16x128xf32, #tpu.memory_space<vmem>>, %arg2: memref<1x128xf32, #tpu.memory_space<vmem>>, %arg3: memref<1x128xf32, #tpu.memory_space<vmem>>, %arg4: memref<7x128xf32, #tpu.memory_space<vmem>>, %arg5: memref<128x128xf32, #tpu.memory_space<vmem>>, %arg6: memref<1x128xf32, #tpu.memory_space<vmem>>, %arg7: memref<1x16x128xf32, #tpu.memory_space<vmem>>, %arg8: memref<27x128xf32, #tpu.memory_space<vmem>>) attributes {dimension_semantics = [#tpu.dimension_semantics<parallel>], iteration_bounds = array<i64: 2>, scalar_prefetch = 0 : i64, scratch_operands = 1 : i64, tpu.core_type = #tpu.core_type<tc>, window_params = [{transform_indices = @transform_0, window_bounds = array<i64: 1, 16, 128>}, {pipeline_mode = #tpu.pipeline_mode<synchronous>, transform_indices = @transform_1, window_bounds = array<i64: 1, 128>}, {pipeline_mode = #tpu.pipeline_mode<synchronous>, transform_indices = @transform_2, window_bounds = array<i64: 1, 128>}, {pipeline_mode = #tpu.pipeline_mode<synchronous>, transform_indices = @transform_3, window_bounds = array<i64: 7, 128>}, {pipeline_mode = #tpu.pipeline_mode<synchronous>, transform_indices = @transform_4, window_bounds = array<i64: 128, 128>}, {pipeline_mode = #tpu.pipeline_mode<synchronous>, transform_indices = @transform_5, window_bounds = array<i64: 1, 128>}, {transform_indices = @transform_6, window_bounds = array<i64: 1, 16, 128>}]} {
    %c0 = arith.constant 0 : index
    %c0_0 = arith.constant 0 : index
    %c0_1 = arith.constant 0 : index
    %0 = vector.load %arg1[%c0, %c0_0, %c0_1] : memref<1x16x128xf32, #tpu.memory_space<vmem>>, vector<1x16x128xf32>
    %1 = vector.shape_cast %0 : vector<1x16x128xf32> to vector<16x128xf32>
    %c0_2 = arith.constant 0 : index
    %c0_3 = arith.constant 0 : index
    %2 = vector.load %arg2[%c0_2, %c0_3] : memref<1x128xf32, #tpu.memory_space<vmem>>, vector<1x128xf32>
    %c0_4 = arith.constant 0 : index
    %c0_5 = arith.constant 0 : index
    %3 = vector.load %arg3[%c0_4, %c0_5] : memref<1x128xf32, #tpu.memory_space<vmem>>, vector<1x128xf32>
    %cst = arith.constant dense<0.000000e+00> : vector<16xf32>
    %4 = vector.multi_reduction <add>, %1, %cst [1] : vector<16x128xf32> to vector<16xf32>
    %5 = vector.shape_cast %4 : vector<16xf32> to vector<16x1xf32>
    %cst_6 = arith.constant 1.280000e+02 : f32
    %6 = vector.broadcast %cst_6 : f32 to vector<16x1xf32>
    %7 = arith.divf %5, %6 : vector<16x1xf32>
    %8 = vector.broadcast %7 : vector<16x1xf32> to vector<16x128xf32>
    %9 = arith.subf %1, %8 : vector<16x128xf32>
    %10 = arith.mulf %9, %9 : vector<16x128xf32>
    %cst_7 = arith.constant dense<0.000000e+00> : vector<16xf32>
    %11 = vector.multi_reduction <add>, %10, %cst_7 [1] : vector<16x128xf32> to vector<16xf32>
    %12 = vector.shape_cast %11 : vector<16xf32> to vector<16x1xf32>
    %cst_8 = arith.constant 1.280000e+02 : f32
    %13 = vector.broadcast %cst_8 : f32 to vector<16x1xf32>
    %14 = arith.divf %12, %13 : vector<16x1xf32>
    %cst_9 = arith.constant 9.99999997E-7 : f32
    %15 = vector.broadcast %cst_9 : f32 to vector<16x1xf32>
    %16 = arith.addf %14, %15 : vector<16x1xf32>
    %17 = math.rsqrt %16 : vector<16x1xf32>
    %18 = vector.broadcast %17 : vector<16x1xf32> to vector<16x128xf32>
    %19 = arith.mulf %9, %18 : vector<16x128xf32>
    %20 = vector.broadcast %2 : vector<1x128xf32> to vector<16x128xf32>
    %21 = arith.mulf %19, %20 : vector<16x128xf32>
    %22 = vector.broadcast %3 : vector<1x128xf32> to vector<16x128xf32>
    %23 = arith.addf %21, %22 : vector<16x128xf32>
    %cst_10 = arith.constant 0.000000e+00 : f32
    %24 = vector.broadcast %cst_10 : f32 to vector<27x128xf32>
    %c0_11 = arith.constant 0 : index
    %c0_12 = arith.constant 0 : index
    %25 = vector.load %arg8[%c0_11, %c0_12] : memref<27x128xf32, #tpu.memory_space<vmem>>, vector<27x128xf32>
    tpu.vector_store %arg8[%c0_11, %c0_12], %24 {strides = array<i32>} : memref<27x128xf32, #tpu.memory_space<vmem>>, vector<27x128xf32>,
    %c8 = arith.constant 8 : index
    %c0_13 = arith.constant 0 : index
    %26 = vector.load %arg8[%c8, %c0_13] : memref<27x128xf32, #tpu.memory_space<vmem>>, vector<16x128xf32>
    tpu.vector_store %arg8[%c8, %c0_13], %23 {strides = array<i32>} : memref<27x128xf32, #tpu.memory_space<vmem>>, vector<16x128xf32>,
    %c5 = arith.constant 5 : index
    %c0_14 = arith.constant 0 : index
    %27 = vector.load %arg8[%c5, %c0_14] : memref<27x128xf32, #tpu.memory_space<vmem>>, vector<16x128xf32>
    %c0_15 = arith.constant 0 : index
    %c0_16 = arith.constant 0 : index
    %28 = vector.load %arg4[%c0_15, %c0_16] : memref<7x128xf32, #tpu.memory_space<vmem>>, vector<1x128xf32>
    %29 = vector.broadcast %28 : vector<1x128xf32> to vector<16x128xf32>
    %30 = arith.mulf %27, %29 : vector<16x128xf32>
    %c6 = arith.constant 6 : index
    %c0_17 = arith.constant 0 : index
    %31 = vector.load %arg8[%c6, %c0_17] : memref<27x128xf32, #tpu.memory_space<vmem>>, vector<16x128xf32>
    %c1 = arith.constant 1 : index
    %c0_18 = arith.constant 0 : index
    %32 = vector.load %arg4[%c1, %c0_18] : memref<7x128xf32, #tpu.memory_space<vmem>>, vector<1x128xf32>
    %33 = vector.broadcast %32 : vector<1x128xf32> to vector<16x128xf32>
    %34 = arith.mulf %31, %33 : vector<16x128xf32>
    %35 = arith.addf %30, %34 : vector<16x128xf32>
    %c7 = arith.constant 7 : index
    %c0_19 = arith.constant 0 : index
    %36 = vector.load %arg8[%c7, %c0_19] : memref<27x128xf32, #tpu.memory_space<vmem>>, vector<16x128xf32>
    %c2 = arith.constant 2 : index
    %c0_20 = arith.constant 0 : index
    %37 = vector.load %arg4[%c2, %c0_20] : memref<7x128xf32, #tpu.memory_space<vmem>>, vector<1x128xf32>
    %38 = vector.broadcast %37 : vector<1x128xf32> to vector<16x128xf32>
    %39 = arith.mulf %36, %38 : vector<16x128xf32>
    %40 = arith.addf %35, %39 : vector<16x128xf32>
    %c8_21 = arith.constant 8 : index
    %c0_22 = arith.constant 0 : index
    %41 = vector.load %arg8[%c8_21, %c0_22] : memref<27x128xf32, #tpu.memory_space<vmem>>, vector<16x128xf32>
    %c3 = arith.constant 3 : index
    %c0_23 = arith.constant 0 : index
    %42 = vector.load %arg4[%c3, %c0_23] : memref<7x128xf32, #tpu.memory_space<vmem>>, vector<1x128xf32>
    %43 = vector.broadcast %42 : vector<1x128xf32> to vector<16x128xf32>
    %44 = arith.mulf %41, %43 : vector<16x128xf32>
    %45 = arith.addf %40, %44 : vector<16x128xf32>
    %c9 = arith.constant 9 : index
    %c0_24 = arith.constant 0 : index
    %46 = vector.load %arg8[%c9, %c0_24] : memref<27x128xf32, #tpu.memory_space<vmem>>, vector<16x128xf32>
    %c4 = arith.constant 4 : index
    %c0_25 = arith.constant 0 : index
    %47 = vector.load %arg4[%c4, %c0_25] : memref<7x128xf32, #tpu.memory_space<vmem>>, vector<1x128xf32>
    %48 = vector.broadcast %47 : vector<1x128xf32> to vector<16x128xf32>
    %49 = arith.mulf %46, %48 : vector<16x128xf32>
    %50 = arith.addf %45, %49 : vector<16x128xf32>
    %c10 = arith.constant 10 : index
    %c0_26 = arith.constant 0 : index
    %51 = vector.load %arg8[%c10, %c0_26] : memref<27x128xf32, #tpu.memory_space<vmem>>, vector<16x128xf32>
    %c5_27 = arith.constant 5 : index
    %c0_28 = arith.constant 0 : index
    %52 = vector.load %arg4[%c5_27, %c0_28] : memref<7x128xf32, #tpu.memory_space<vmem>>, vector<1x128xf32>
    %53 = vector.broadcast %52 : vector<1x128xf32> to vector<16x128xf32>
    %54 = arith.mulf %51, %53 : vector<16x128xf32>
    %55 = arith.addf %50, %54 : vector<16x128xf32>
    %c11 = arith.constant 11 : index
    %c0_29 = arith.constant 0 : index
    %56 = vector.load %arg8[%c11, %c0_29] : memref<27x128xf32, #tpu.memory_space<vmem>>, vector<16x128xf32>
    %c6_30 = arith.constant 6 : index
    %c0_31 = arith.constant 0 : index
    %57 = vector.load %arg4[%c6_30, %c0_31] : memref<7x128xf32, #tpu.memory_space<vmem>>, vector<1x128xf32>
    %58 = vector.broadcast %57 : vector<1x128xf32> to vector<16x128xf32>
    %59 = arith.mulf %56, %58 : vector<16x128xf32>
    %60 = arith.addf %55, %59 : vector<16x128xf32>
    %c0_32 = arith.constant 0 : index
    %c0_33 = arith.constant 0 : index
    %61 = vector.load %arg5[%c0_32, %c0_33] : memref<128x128xf32, #tpu.memory_space<vmem>>, vector<128x128xf32>
    %cst_34 = arith.constant dense<0.000000e+00> : vector<16x128xf32>
    %62 = tpu.matmul %60, %61, %cst_34 {dimension_numbers = #tpu.dot_dimension_numbers<[1], [0], [0], [1], [0, 0, 1, 1], [], []>} : vector<16x128xf32>, vector<128x128xf32>, vector<16x128xf32> -> vector<16x128xf32>
    %c0_35 = arith.constant 0 : index
    %c0_36 = arith.constant 0 : index
    %63 = vector.load %arg6[%c0_35, %c0_36] : memref<1x128xf32, #tpu.memory_space<vmem>>, vector<1x128xf32>
    %64 = vector.broadcast %63 : vector<1x128xf32> to vector<16x128xf32>
    %65 = arith.addf %62, %64 : vector<16x128xf32>
    %cst_37 = arith.constant 0.000000e+00 : f32
    %66 = vector.broadcast %cst_37 : f32 to vector<16x128xf32>
    %67 = arith.maximumf %65, %66 : vector<16x128xf32>
    %68 = arith.addf %67, %1 : vector<16x128xf32>
    %c0_38 = arith.constant 0 : index
    %c0_39 = arith.constant 0 : index
    %c0_40 = arith.constant 0 : index
    %69 = vector.load %arg7[%c0_38, %c0_39, %c0_40] : memref<1x16x128xf32, #tpu.memory_space<vmem>>, vector<1x16x128xf32>
    %70 = vector.shape_cast %69 : vector<1x16x128xf32> to vector<16x128xf32>
    %71 = vector.shape_cast %68 : vector<16x128xf32> to vector<1x16x128xf32>
    tpu.vector_store %arg7[%c0_38, %c0_39, %c0_40], %71 {strides = array<i32>} : memref<1x16x128xf32, #tpu.memory_space<vmem>>, vector<1x16x128xf32>,
    return
  }
  func.func @transform_0(%arg0: i32) -> (i32, i32, i32) {
    %c0_i32 = arith.constant 0 : i32
    %c0_i32_0 = arith.constant 0 : i32
    %c0_i32_1 = arith.constant 0 : i32
    return %arg0, %c0_i32, %c0_i32_0 : i32, i32, i32
  }
  func.func @transform_1(%arg0: i32) -> (i32, i32) {
    %c0_i32 = arith.constant 0 : i32
    %c0_i32_0 = arith.constant 0 : i32
    %c0_i32_1 = arith.constant 0 : i32
    return %c0_i32, %c0_i32_0 : i32, i32
  }
  func.func @transform_2(%arg0: i32) -> (i32, i32) {
    %c0_i32 = arith.constant 0 : i32
    %c0_i32_0 = arith.constant 0 : i32
    %c0_i32_1 = arith.constant 0 : i32
    return %c0_i32, %c0_i32_0 : i32, i32
  }
  func.func @transform_3(%arg0: i32) -> (i32, i32) {
    %c0_i32 = arith.constant 0 : i32
    %c0_i32_0 = arith.constant 0 : i32
    %c0_i32_1 = arith.constant 0 : i32
    return %c0_i32, %c0_i32_0 : i32, i32
  }
  func.func @transform_4(%arg0: i32) -> (i32, i32) {
    %c0_i32 = arith.constant 0 : i32
    %c0_i32_0 = arith.constant 0 : i32
    %c0_i32_1 = arith.constant 0 : i32
    return %c0_i32, %c0_i32_0 : i32, i32
  }
  func.func @transform_5(%arg0: i32) -> (i32, i32) {
    %c0_i32 = arith.constant 0 : i32
    %c0_i32_0 = arith.constant 0 : i32
    %c0_i32_1 = arith.constant 0 : i32
    return %c0_i32, %c0_i32_0 : i32, i32
  }
  func.func @transform_6(%arg0: i32) -> (i32, i32, i32) {
    %c0_i32 = arith.constant 0 : i32
    %c0_i32_0 = arith.constant 0 : i32
    %c0_i32_1 = arith.constant 0 : i32
    return %arg0, %c0_i32, %c0_i32_0 : i32, i32, i32
  }
}

module attributes {stable_mosaic.version = 11 : i64} {
  func.func @_attn_block_kernel(%arg0: i32, %arg1: memref<1x16x128xf32, #tpu.memory_space<vmem>>, %arg2: memref<1x1x16xf32, #tpu.memory_space<vmem>>, %arg3: memref<1x128xf32, #tpu.memory_space<vmem>>, %arg4: memref<1x128xf32, #tpu.memory_space<vmem>>, %arg5: memref<128x384xf32, #tpu.memory_space<vmem>>, %arg6: memref<1x384xf32, #tpu.memory_space<vmem>>, %arg7: memref<1x128xf32, #tpu.memory_space<vmem>>, %arg8: memref<1x128xf32, #tpu.memory_space<vmem>>, %arg9: memref<128x128xf32, #tpu.memory_space<vmem>>, %arg10: memref<1x128xf32, #tpu.memory_space<vmem>>, %arg11: memref<1x16x128xf32, #tpu.memory_space<vmem>>) attributes {dimension_semantics = [#tpu.dimension_semantics<parallel>], iteration_bounds = array<i64: 2>, scalar_prefetch = 0 : i64, scratch_operands = 0 : i64, tpu.core_type = #tpu.core_type<tc>, window_params = [{transform_indices = @transform_0, window_bounds = array<i64: 1, 16, 128>}, {transform_indices = @transform_1, window_bounds = array<i64: 1, 1, 16>}, {pipeline_mode = #tpu.pipeline_mode<synchronous>, transform_indices = @transform_2, window_bounds = array<i64: 1, 128>}, {pipeline_mode = #tpu.pipeline_mode<synchronous>, transform_indices = @transform_3, window_bounds = array<i64: 1, 128>}, {pipeline_mode = #tpu.pipeline_mode<synchronous>, transform_indices = @transform_4, window_bounds = array<i64: 128, 384>}, {pipeline_mode = #tpu.pipeline_mode<synchronous>, transform_indices = @transform_5, window_bounds = array<i64: 1, 384>}, {pipeline_mode = #tpu.pipeline_mode<synchronous>, transform_indices = @transform_6, window_bounds = array<i64: 1, 128>}, {pipeline_mode = #tpu.pipeline_mode<synchronous>, transform_indices = @transform_7, window_bounds = array<i64: 1, 128>}, {pipeline_mode = #tpu.pipeline_mode<synchronous>, transform_indices = @transform_8, window_bounds = array<i64: 128, 128>}, {pipeline_mode = #tpu.pipeline_mode<synchronous>, transform_indices = @transform_9, window_bounds = array<i64: 1, 128>}, {transform_indices = @transform_10, window_bounds = array<i64: 1, 16, 128>}]} {
    %c0 = arith.constant 0 : index
    %c0_0 = arith.constant 0 : index
    %c0_1 = arith.constant 0 : index
    %0 = vector.load %arg1[%c0, %c0_0, %c0_1] : memref<1x16x128xf32, #tpu.memory_space<vmem>>, vector<1x16x128xf32>
    %1 = vector.shape_cast %0 : vector<1x16x128xf32> to vector<16x128xf32>
    %c0_2 = arith.constant 0 : index
    %c0_3 = arith.constant 0 : index
    %2 = vector.load %arg3[%c0_2, %c0_3] : memref<1x128xf32, #tpu.memory_space<vmem>>, vector<1x128xf32>
    %c0_4 = arith.constant 0 : index
    %c0_5 = arith.constant 0 : index
    %3 = vector.load %arg4[%c0_4, %c0_5] : memref<1x128xf32, #tpu.memory_space<vmem>>, vector<1x128xf32>
    %cst = arith.constant dense<0.000000e+00> : vector<16xf32>
    %4 = vector.multi_reduction <add>, %1, %cst [1] : vector<16x128xf32> to vector<16xf32>
    %5 = vector.shape_cast %4 : vector<16xf32> to vector<16x1xf32>
    %cst_6 = arith.constant 1.280000e+02 : f32
    %6 = vector.broadcast %cst_6 : f32 to vector<16x1xf32>
    %7 = arith.divf %5, %6 : vector<16x1xf32>
    %8 = vector.broadcast %7 : vector<16x1xf32> to vector<16x128xf32>
    %9 = arith.subf %1, %8 : vector<16x128xf32>
    %10 = arith.mulf %9, %9 : vector<16x128xf32>
    %cst_7 = arith.constant dense<0.000000e+00> : vector<16xf32>
    %11 = vector.multi_reduction <add>, %10, %cst_7 [1] : vector<16x128xf32> to vector<16xf32>
    %12 = vector.shape_cast %11 : vector<16xf32> to vector<16x1xf32>
    %cst_8 = arith.constant 1.280000e+02 : f32
    %13 = vector.broadcast %cst_8 : f32 to vector<16x1xf32>
    %14 = arith.divf %12, %13 : vector<16x1xf32>
    %cst_9 = arith.constant 9.99999997E-7 : f32
    %15 = vector.broadcast %cst_9 : f32 to vector<16x1xf32>
    %16 = arith.addf %14, %15 : vector<16x1xf32>
    %17 = math.rsqrt %16 : vector<16x1xf32>
    %18 = vector.broadcast %17 : vector<16x1xf32> to vector<16x128xf32>
    %19 = arith.mulf %9, %18 : vector<16x128xf32>
    %20 = vector.broadcast %2 : vector<1x128xf32> to vector<16x128xf32>
    %21 = arith.mulf %19, %20 : vector<16x128xf32>
    %22 = vector.broadcast %3 : vector<1x128xf32> to vector<16x128xf32>
    %23 = arith.addf %21, %22 : vector<16x128xf32>
    %c0_10 = arith.constant 0 : index
    %c0_11 = arith.constant 0 : index
    %24 = vector.load %arg5[%c0_10, %c0_11] : memref<128x384xf32, #tpu.memory_space<vmem>>, vector<128x384xf32>
    %cst_12 = arith.constant dense<0.000000e+00> : vector<16x384xf32>
    %25 = tpu.matmul %23, %24, %cst_12 {dimension_numbers = #tpu.dot_dimension_numbers<[1], [0], [0], [1], [0, 0, 1, 1], [], []>} : vector<16x128xf32>, vector<128x384xf32>, vector<16x384xf32> -> vector<16x384xf32>
    %c0_13 = arith.constant 0 : index
    %c0_14 = arith.constant 0 : index
    %26 = vector.load %arg6[%c0_13, %c0_14] : memref<1x384xf32, #tpu.memory_space<vmem>>, vector<1x384xf32>
    %27 = vector.broadcast %26 : vector<1x384xf32> to vector<16x384xf32>
    %28 = arith.addf %25, %27 : vector<16x384xf32>
    %29 = vector.extract_strided_slice %28 {offsets = [0, 0], sizes = [16, 128], strides = [1, 1]} : vector<16x384xf32> to vector<16x128xf32>
    %cst_15 = arith.constant 0.176776692 : f32
    %30 = vector.broadcast %cst_15 : f32 to vector<16x128xf32>
    %31 = arith.mulf %29, %30 : vector<16x128xf32>
    %32 = vector.extract_strided_slice %28 {offsets = [0, 128], sizes = [16, 128], strides = [1, 1]} : vector<16x384xf32> to vector<16x128xf32>
    %33 = vector.extract_strided_slice %28 {offsets = [0, 256], sizes = [16, 128], strides = [1, 1]} : vector<16x384xf32> to vector<16x128xf32>
    %c0_16 = arith.constant 0 : index
    %c0_17 = arith.constant 0 : index
    %c0_18 = arith.constant 0 : index
    %34 = vector.load %arg2[%c0_16, %c0_17, %c0_18] : memref<1x1x16xf32, #tpu.memory_space<vmem>>, vector<1x1x16xf32>
    %35 = vector.shape_cast %34 : vector<1x1x16xf32> to vector<1x16xf32>
    %cst_19 = arith.constant 1.000000e+00 : f32
    %36 = vector.broadcast %cst_19 : f32 to vector<1x16xf32>
    %37 = arith.subf %36, %35 : vector<1x16xf32>
    %cst_20 = arith.constant -1.000000e+30 : f32
    %38 = vector.broadcast %cst_20 : f32 to vector<1x16xf32>
    %39 = arith.mulf %37, %38 : vector<1x16xf32>
    %40 = tpu.iota {dimensions = array<i32: 1>} : vector<1x128xi32>
    %cst_21 = arith.constant 0.000000e+00 : f32
    %41 = vector.broadcast %cst_21 : f32 to vector<16x128xf32>
    %c0_i32 = arith.constant 0 : i32
    %42 = vector.broadcast %c0_i32 : i32 to vector<1x128xi32>
    %43 = arith.cmpi sge, %40, %42 : vector<1x128xi32>
    %c32_i32 = arith.constant 32 : i32
    %44 = vector.broadcast %c32_i32 : i32 to vector<1x128xi32>
    %45 = arith.cmpi slt, %40, %44 : vector<1x128xi32>
    %46 = arith.andi %43, %45 : vector<1x128xi1>
    %cst_22 = arith.constant 0.000000e+00 : f32
    %47 = vector.shape_cast %46 : vector<1x128xi1> to vector<1x128xi1>
    %48 = vector.broadcast %47 : vector<1x128xi1> to vector<16x128xi1>
    %49 = vector.broadcast %cst_22 : f32 to vector<16x128xf32>
    %50 = arith.select %48, %31, %49 : vector<16x128xi1>, vector<16x128xf32>
    %cst_23 = arith.constant dense<0.000000e+00> : vector<16x16xf32>
    %51 = tpu.matmul %50, %32, %cst_23 {dimension_numbers = #tpu.dot_dimension_numbers<[1], [1], [0], [0], [0, 0, 1, 0], [], []>} : vector<16x128xf32>, vector<16x128xf32>, vector<16x16xf32> -> vector<16x16xf32>
    %52 = vector.broadcast %39 : vector<1x16xf32> to vector<16x16xf32>
    %53 = arith.addf %51, %52 : vector<16x16xf32>
    %cst_24 = arith.constant dense<0xFF800000> : vector<16xf32>
    %54 = vector.multi_reduction <maximumf>, %53, %cst_24 [1] : vector<16x16xf32> to vector<16xf32>
    %55 = vector.shape_cast %54 : vector<16xf32> to vector<16x1xf32>
    %56 = vector.broadcast %55 : vector<16x1xf32> to vector<16x16xf32>
    %57 = arith.subf %53, %56 : vector<16x16xf32>
    %58 = math.exp %57 : vector<16x16xf32>
    %cst_25 = arith.constant dense<0.000000e+00> : vector<16xf32>
    %59 = vector.multi_reduction <add>, %58, %cst_25 [1] : vector<16x16xf32> to vector<16xf32>
    %60 = vector.shape_cast %59 : vector<16xf32> to vector<16x1xf32>
    %61 = tpu.reciprocal %60 {approx = true} : vector<16x1xf32> -> vector<16x1xf32>
    %62 = vector.broadcast %61 : vector<16x1xf32> to vector<16x16xf32>
    %63 = arith.mulf %58, %62 : vector<16x16xf32>
    %cst_26 = arith.constant 0.000000e+00 : f32
    %64 = vector.shape_cast %46 : vector<1x128xi1> to vector<1x128xi1>
    %65 = vector.broadcast %64 : vector<1x128xi1> to vector<16x128xi1>
    %66 = vector.broadcast %cst_26 : f32 to vector<16x128xf32>
    %67 = arith.select %65, %33, %66 : vector<16x128xi1>, vector<16x128xf32>
    %cst_27 = arith.constant dense<0.000000e+00> : vector<16x128xf32>
    %68 = tpu.matmul %63, %67, %cst_27 {dimension_numbers = #tpu.dot_dimension_numbers<[1], [0], [0], [1], [0, 0, 1, 1], [], []>} : vector<16x16xf32>, vector<16x128xf32>, vector<16x128xf32> -> vector<16x128xf32>
    %69 = arith.addf %41, %68 : vector<16x128xf32>
    %c32_i32_28 = arith.constant 32 : i32
    %70 = vector.broadcast %c32_i32_28 : i32 to vector<1x128xi32>
    %71 = arith.cmpi sge, %40, %70 : vector<1x128xi32>
    %c64_i32 = arith.constant 64 : i32
    %72 = vector.broadcast %c64_i32 : i32 to vector<1x128xi32>
    %73 = arith.cmpi slt, %40, %72 : vector<1x128xi32>
    %74 = arith.andi %71, %73 : vector<1x128xi1>
    %cst_29 = arith.constant 0.000000e+00 : f32
    %75 = vector.shape_cast %74 : vector<1x128xi1> to vector<1x128xi1>
    %76 = vector.broadcast %75 : vector<1x128xi1> to vector<16x128xi1>
    %77 = vector.broadcast %cst_29 : f32 to vector<16x128xf32>
    %78 = arith.select %76, %31, %77 : vector<16x128xi1>, vector<16x128xf32>
    %cst_30 = arith.constant dense<0.000000e+00> : vector<16x16xf32>
    %79 = tpu.matmul %78, %32, %cst_30 {dimension_numbers = #tpu.dot_dimension_numbers<[1], [1], [0], [0], [0, 0, 1, 0], [], []>} : vector<16x128xf32>, vector<16x128xf32>, vector<16x16xf32> -> vector<16x16xf32>
    %80 = vector.broadcast %39 : vector<1x16xf32> to vector<16x16xf32>
    %81 = arith.addf %79, %80 : vector<16x16xf32>
    %cst_31 = arith.constant dense<0xFF800000> : vector<16xf32>
    %82 = vector.multi_reduction <maximumf>, %81, %cst_31 [1] : vector<16x16xf32> to vector<16xf32>
    %83 = vector.shape_cast %82 : vector<16xf32> to vector<16x1xf32>
    %84 = vector.broadcast %83 : vector<16x1xf32> to vector<16x16xf32>
    %85 = arith.subf %81, %84 : vector<16x16xf32>
    %86 = math.exp %85 : vector<16x16xf32>
    %cst_32 = arith.constant dense<0.000000e+00> : vector<16xf32>
    %87 = vector.multi_reduction <add>, %86, %cst_32 [1] : vector<16x16xf32> to vector<16xf32>
    %88 = vector.shape_cast %87 : vector<16xf32> to vector<16x1xf32>
    %89 = tpu.reciprocal %88 {approx = true} : vector<16x1xf32> -> vector<16x1xf32>
    %90 = vector.broadcast %89 : vector<16x1xf32> to vector<16x16xf32>
    %91 = arith.mulf %86, %90 : vector<16x16xf32>
    %cst_33 = arith.constant 0.000000e+00 : f32
    %92 = vector.shape_cast %74 : vector<1x128xi1> to vector<1x128xi1>
    %93 = vector.broadcast %92 : vector<1x128xi1> to vector<16x128xi1>
    %94 = vector.broadcast %cst_33 : f32 to vector<16x128xf32>
    %95 = arith.select %93, %33, %94 : vector<16x128xi1>, vector<16x128xf32>
    %cst_34 = arith.constant dense<0.000000e+00> : vector<16x128xf32>
    %96 = tpu.matmul %91, %95, %cst_34 {dimension_numbers = #tpu.dot_dimension_numbers<[1], [0], [0], [1], [0, 0, 1, 1], [], []>} : vector<16x16xf32>, vector<16x128xf32>, vector<16x128xf32> -> vector<16x128xf32>
    %97 = arith.addf %69, %96 : vector<16x128xf32>
    %c64_i32_35 = arith.constant 64 : i32
    %98 = vector.broadcast %c64_i32_35 : i32 to vector<1x128xi32>
    %99 = arith.cmpi sge, %40, %98 : vector<1x128xi32>
    %c96_i32 = arith.constant 96 : i32
    %100 = vector.broadcast %c96_i32 : i32 to vector<1x128xi32>
    %101 = arith.cmpi slt, %40, %100 : vector<1x128xi32>
    %102 = arith.andi %99, %101 : vector<1x128xi1>
    %cst_36 = arith.constant 0.000000e+00 : f32
    %103 = vector.shape_cast %102 : vector<1x128xi1> to vector<1x128xi1>
    %104 = vector.broadcast %103 : vector<1x128xi1> to vector<16x128xi1>
    %105 = vector.broadcast %cst_36 : f32 to vector<16x128xf32>
    %106 = arith.select %104, %31, %105 : vector<16x128xi1>, vector<16x128xf32>
    %cst_37 = arith.constant dense<0.000000e+00> : vector<16x16xf32>
    %107 = tpu.matmul %106, %32, %cst_37 {dimension_numbers = #tpu.dot_dimension_numbers<[1], [1], [0], [0], [0, 0, 1, 0], [], []>} : vector<16x128xf32>, vector<16x128xf32>, vector<16x16xf32> -> vector<16x16xf32>
    %108 = vector.broadcast %39 : vector<1x16xf32> to vector<16x16xf32>
    %109 = arith.addf %107, %108 : vector<16x16xf32>
    %cst_38 = arith.constant dense<0xFF800000> : vector<16xf32>
    %110 = vector.multi_reduction <maximumf>, %109, %cst_38 [1] : vector<16x16xf32> to vector<16xf32>
    %111 = vector.shape_cast %110 : vector<16xf32> to vector<16x1xf32>
    %112 = vector.broadcast %111 : vector<16x1xf32> to vector<16x16xf32>
    %113 = arith.subf %109, %112 : vector<16x16xf32>
    %114 = math.exp %113 : vector<16x16xf32>
    %cst_39 = arith.constant dense<0.000000e+00> : vector<16xf32>
    %115 = vector.multi_reduction <add>, %114, %cst_39 [1] : vector<16x16xf32> to vector<16xf32>
    %116 = vector.shape_cast %115 : vector<16xf32> to vector<16x1xf32>
    %117 = tpu.reciprocal %116 {approx = true} : vector<16x1xf32> -> vector<16x1xf32>
    %118 = vector.broadcast %117 : vector<16x1xf32> to vector<16x16xf32>
    %119 = arith.mulf %114, %118 : vector<16x16xf32>
    %cst_40 = arith.constant 0.000000e+00 : f32
    %120 = vector.shape_cast %102 : vector<1x128xi1> to vector<1x128xi1>
    %121 = vector.broadcast %120 : vector<1x128xi1> to vector<16x128xi1>
    %122 = vector.broadcast %cst_40 : f32 to vector<16x128xf32>
    %123 = arith.select %121, %33, %122 : vector<16x128xi1>, vector<16x128xf32>
    %cst_41 = arith.constant dense<0.000000e+00> : vector<16x128xf32>
    %124 = tpu.matmul %119, %123, %cst_41 {dimension_numbers = #tpu.dot_dimension_numbers<[1], [0], [0], [1], [0, 0, 1, 1], [], []>} : vector<16x16xf32>, vector<16x128xf32>, vector<16x128xf32> -> vector<16x128xf32>
    %125 = arith.addf %97, %124 : vector<16x128xf32>
    %c96_i32_42 = arith.constant 96 : i32
    %126 = vector.broadcast %c96_i32_42 : i32 to vector<1x128xi32>
    %127 = arith.cmpi sge, %40, %126 : vector<1x128xi32>
    %c128_i32 = arith.constant 128 : i32
    %128 = vector.broadcast %c128_i32 : i32 to vector<1x128xi32>
    %129 = arith.cmpi slt, %40, %128 : vector<1x128xi32>
    %130 = arith.andi %127, %129 : vector<1x128xi1>
    %cst_43 = arith.constant 0.000000e+00 : f32
    %131 = vector.shape_cast %130 : vector<1x128xi1> to vector<1x128xi1>
    %132 = vector.broadcast %131 : vector<1x128xi1> to vector<16x128xi1>
    %133 = vector.broadcast %cst_43 : f32 to vector<16x128xf32>
    %134 = arith.select %132, %31, %133 : vector<16x128xi1>, vector<16x128xf32>
    %cst_44 = arith.constant dense<0.000000e+00> : vector<16x16xf32>
    %135 = tpu.matmul %134, %32, %cst_44 {dimension_numbers = #tpu.dot_dimension_numbers<[1], [1], [0], [0], [0, 0, 1, 0], [], []>} : vector<16x128xf32>, vector<16x128xf32>, vector<16x16xf32> -> vector<16x16xf32>
    %136 = vector.broadcast %39 : vector<1x16xf32> to vector<16x16xf32>
    %137 = arith.addf %135, %136 : vector<16x16xf32>
    %cst_45 = arith.constant dense<0xFF800000> : vector<16xf32>
    %138 = vector.multi_reduction <maximumf>, %137, %cst_45 [1] : vector<16x16xf32> to vector<16xf32>
    %139 = vector.shape_cast %138 : vector<16xf32> to vector<16x1xf32>
    %140 = vector.broadcast %139 : vector<16x1xf32> to vector<16x16xf32>
    %141 = arith.subf %137, %140 : vector<16x16xf32>
    %142 = math.exp %141 : vector<16x16xf32>
    %cst_46 = arith.constant dense<0.000000e+00> : vector<16xf32>
    %143 = vector.multi_reduction <add>, %142, %cst_46 [1] : vector<16x16xf32> to vector<16xf32>
    %144 = vector.shape_cast %143 : vector<16xf32> to vector<16x1xf32>
    %145 = tpu.reciprocal %144 {approx = true} : vector<16x1xf32> -> vector<16x1xf32>
    %146 = vector.broadcast %145 : vector<16x1xf32> to vector<16x16xf32>
    %147 = arith.mulf %142, %146 : vector<16x16xf32>
    %cst_47 = arith.constant 0.000000e+00 : f32
    %148 = vector.shape_cast %130 : vector<1x128xi1> to vector<1x128xi1>
    %149 = vector.broadcast %148 : vector<1x128xi1> to vector<16x128xi1>
    %150 = vector.broadcast %cst_47 : f32 to vector<16x128xf32>
    %151 = arith.select %149, %33, %150 : vector<16x128xi1>, vector<16x128xf32>
    %cst_48 = arith.constant dense<0.000000e+00> : vector<16x128xf32>
    %152 = tpu.matmul %147, %151, %cst_48 {dimension_numbers = #tpu.dot_dimension_numbers<[1], [0], [0], [1], [0, 0, 1, 1], [], []>} : vector<16x16xf32>, vector<16x128xf32>, vector<16x128xf32> -> vector<16x128xf32>
    %153 = arith.addf %125, %152 : vector<16x128xf32>
    %154 = arith.addf %153, %1 : vector<16x128xf32>
    %c0_49 = arith.constant 0 : index
    %c0_50 = arith.constant 0 : index
    %155 = vector.load %arg7[%c0_49, %c0_50] : memref<1x128xf32, #tpu.memory_space<vmem>>, vector<1x128xf32>
    %c0_51 = arith.constant 0 : index
    %c0_52 = arith.constant 0 : index
    %156 = vector.load %arg8[%c0_51, %c0_52] : memref<1x128xf32, #tpu.memory_space<vmem>>, vector<1x128xf32>
    %cst_53 = arith.constant dense<0.000000e+00> : vector<16xf32>
    %157 = vector.multi_reduction <add>, %154, %cst_53 [1] : vector<16x128xf32> to vector<16xf32>
    %158 = vector.shape_cast %157 : vector<16xf32> to vector<16x1xf32>
    %cst_54 = arith.constant 1.280000e+02 : f32
    %159 = vector.broadcast %cst_54 : f32 to vector<16x1xf32>
    %160 = arith.divf %158, %159 : vector<16x1xf32>
    %161 = vector.broadcast %160 : vector<16x1xf32> to vector<16x128xf32>
    %162 = arith.subf %154, %161 : vector<16x128xf32>
    %163 = arith.mulf %162, %162 : vector<16x128xf32>
    %cst_55 = arith.constant dense<0.000000e+00> : vector<16xf32>
    %164 = vector.multi_reduction <add>, %163, %cst_55 [1] : vector<16x128xf32> to vector<16xf32>
    %165 = vector.shape_cast %164 : vector<16xf32> to vector<16x1xf32>
    %cst_56 = arith.constant 1.280000e+02 : f32
    %166 = vector.broadcast %cst_56 : f32 to vector<16x1xf32>
    %167 = arith.divf %165, %166 : vector<16x1xf32>
    %cst_57 = arith.constant 9.99999997E-7 : f32
    %168 = vector.broadcast %cst_57 : f32 to vector<16x1xf32>
    %169 = arith.addf %167, %168 : vector<16x1xf32>
    %170 = math.rsqrt %169 : vector<16x1xf32>
    %171 = vector.broadcast %170 : vector<16x1xf32> to vector<16x128xf32>
    %172 = arith.mulf %162, %171 : vector<16x128xf32>
    %173 = vector.broadcast %155 : vector<1x128xf32> to vector<16x128xf32>
    %174 = arith.mulf %172, %173 : vector<16x128xf32>
    %175 = vector.broadcast %156 : vector<1x128xf32> to vector<16x128xf32>
    %176 = arith.addf %174, %175 : vector<16x128xf32>
    %c0_58 = arith.constant 0 : index
    %c0_59 = arith.constant 0 : index
    %177 = vector.load %arg9[%c0_58, %c0_59] : memref<128x128xf32, #tpu.memory_space<vmem>>, vector<128x128xf32>
    %cst_60 = arith.constant dense<0.000000e+00> : vector<16x128xf32>
    %178 = tpu.matmul %176, %177, %cst_60 {dimension_numbers = #tpu.dot_dimension_numbers<[1], [0], [0], [1], [0, 0, 1, 1], [], []>} : vector<16x128xf32>, vector<128x128xf32>, vector<16x128xf32> -> vector<16x128xf32>
    %c0_61 = arith.constant 0 : index
    %c0_62 = arith.constant 0 : index
    %179 = vector.load %arg10[%c0_61, %c0_62] : memref<1x128xf32, #tpu.memory_space<vmem>>, vector<1x128xf32>
    %180 = vector.broadcast %179 : vector<1x128xf32> to vector<16x128xf32>
    %181 = arith.addf %178, %180 : vector<16x128xf32>
    %182 = arith.addf %181, %154 : vector<16x128xf32>
    %c0_63 = arith.constant 0 : index
    %c0_64 = arith.constant 0 : index
    %c0_65 = arith.constant 0 : index
    %183 = vector.load %arg11[%c0_63, %c0_64, %c0_65] : memref<1x16x128xf32, #tpu.memory_space<vmem>>, vector<1x16x128xf32>
    %184 = vector.shape_cast %183 : vector<1x16x128xf32> to vector<16x128xf32>
    %185 = vector.shape_cast %182 : vector<16x128xf32> to vector<1x16x128xf32>
    tpu.vector_store %arg11[%c0_63, %c0_64, %c0_65], %185 {strides = array<i32>} : memref<1x16x128xf32, #tpu.memory_space<vmem>>, vector<1x16x128xf32>,
    return
  }
  func.func @transform_0(%arg0: i32) -> (i32, i32, i32) {
    %c0_i32 = arith.constant 0 : i32
    %c0_i32_0 = arith.constant 0 : i32
    %c0_i32_1 = arith.constant 0 : i32
    return %arg0, %c0_i32, %c0_i32_0 : i32, i32, i32
  }
  func.func @transform_1(%arg0: i32) -> (i32, i32, i32) {
    %c0_i32 = arith.constant 0 : i32
    %c0_i32_0 = arith.constant 0 : i32
    %c0_i32_1 = arith.constant 0 : i32
    return %arg0, %c0_i32, %c0_i32_0 : i32, i32, i32
  }
  func.func @transform_2(%arg0: i32) -> (i32, i32) {
    %c0_i32 = arith.constant 0 : i32
    %c0_i32_0 = arith.constant 0 : i32
    %c0_i32_1 = arith.constant 0 : i32
    return %c0_i32, %c0_i32_0 : i32, i32
  }
  func.func @transform_3(%arg0: i32) -> (i32, i32) {
    %c0_i32 = arith.constant 0 : i32
    %c0_i32_0 = arith.constant 0 : i32
    %c0_i32_1 = arith.constant 0 : i32
    return %c0_i32, %c0_i32_0 : i32, i32
  }
  func.func @transform_4(%arg0: i32) -> (i32, i32) {
    %c0_i32 = arith.constant 0 : i32
    %c0_i32_0 = arith.constant 0 : i32
    %c0_i32_1 = arith.constant 0 : i32
    return %c0_i32, %c0_i32_0 : i32, i32
  }
  func.func @transform_5(%arg0: i32) -> (i32, i32) {
    %c0_i32 = arith.constant 0 : i32
    %c0_i32_0 = arith.constant 0 : i32
    %c0_i32_1 = arith.constant 0 : i32
    return %c0_i32, %c0_i32_0 : i32, i32
  }
  func.func @transform_6(%arg0: i32) -> (i32, i32) {
    %c0_i32 = arith.constant 0 : i32
    %c0_i32_0 = arith.constant 0 : i32
    %c0_i32_1 = arith.constant 0 : i32
    return %c0_i32, %c0_i32_0 : i32, i32
  }
  func.func @transform_7(%arg0: i32) -> (i32, i32) {
    %c0_i32 = arith.constant 0 : i32
    %c0_i32_0 = arith.constant 0 : i32
    %c0_i32_1 = arith.constant 0 : i32
    return %c0_i32, %c0_i32_0 : i32, i32
  }
  func.func @transform_8(%arg0: i32) -> (i32, i32) {
    %c0_i32 = arith.constant 0 : i32
    %c0_i32_0 = arith.constant 0 : i32
    %c0_i32_1 = arith.constant 0 : i32
    return %c0_i32, %c0_i32_0 : i32, i32
  }
  func.func @transform_9(%arg0: i32) -> (i32, i32) {
    %c0_i32 = arith.constant 0 : i32
    %c0_i32_0 = arith.constant 0 : i32
    %c0_i32_1 = arith.constant 0 : i32
    return %c0_i32, %c0_i32_0 : i32, i32
  }
  func.func @transform_10(%arg0: i32) -> (i32, i32, i32) {
    %c0_i32 = arith.constant 0 : i32
    %c0_i32_0 = arith.constant 0 : i32
    %c0_i32_1 = arith.constant 0 : i32
    return %arg0, %c0_i32, %c0_i32_0 : i32, i32, i32
  }
}

</mosaic_0001>

<bundles_post_ra>
// kernel: feature_encoder_forward.5
= control target key start
LH: loop header
LB: loop body
LE: loop exit
PB: predicated region body
PF: predicated region fallthrough
CT: control target
= control target key end

     0   :  { %s700_s21 = smov 0   ;;  %s812_s0 = inlined_call_operand.vmem [shape: f32[2,16,128], index: 0, kind: input, shape index: {}]   ;;  %s813_s1 = inlined_call_operand.vmem [shape: f32[1,128], index: 1, kind: input, shape index: {}]   ;;  %s814_s2 = inlined_call_operand.vmem [shape: f32[1,128], index: 2, kind: input, shape index: {}]   ;;  %s815_s3 = inlined_call_operand.vmem [shape: f32[7,128], index: 3, kind: input, shape index: {}]   ;;  %s816_s4 = inlined_call_operand.vmem [shape: f32[128,128], index: 4, kind: input, shape index: {}]   ;;  %s817_s5 = inlined_call_operand.vmem [shape: f32[1,128], index: 5, kind: input, shape index: {}]   ;;  %s818_s6 = inlined_call_operand.vmem [shape: f32[2,16,128], index: 6, kind: output, shape index: {}]  }
   0x1 LB: > { %s535_s22 = sadd.s32 4294967295, %s662_s21   ;;  %p539_p0 = scmp.ge.s32.totalorder %s662_s21, 1  ;;  %s662_s21 = sphi %s700_s21, %s16_s21  }
   0x2   : > { %p212_p1 = scmp.lt.s32.totalorder %s662_s21, 3 }
   0x4   : > { %p213_p2 = pnand %p539_p0, %p212_p1 }
   0x5   : > { %p242_p3 = scmp.lt.s32.totalorder (!%p213_p2), %s535_s22, 1  ;;  %v664_v2 = vmov (!%p213_p2), 0.0   ;;  %v376_v11 = vld [vmem:[%s816_s4] sm:$0xff] (!%p213_p2)  ;;  %v377_v12 = vld [vmem:[%s816_s4 + $0x8] sm:$0xff] (!%p213_p2)  ;;  %v378_v14 = vld [vmem:[%s816_s4 + $0x10] sm:$0xff] (!%p213_p2) }
   0x6   : > { %216 = sbr.rel (%p213_p2) target bundleno = 575 (0x23f), region = 44  ;;  %295 = vst [vmem:[#allocation2] sm:$0xff] (!%p213_p2), %v664_v2  ;;  %298 = vst [vmem:[#allocation2 + $0x18] sm:$0x7] (!%p213_p2), %v664_v2  ;;  %v611_v13 = vpack.c.bf16 (!%p213_p2), %v377_v12, %v376_v11  ;;  %v379_v15 = vld [vmem:[%s816_s4 + $0x18] sm:$0xff] (!%p213_p2)  ;;  %v380_v17 = vld [vmem:[%s816_s4 + $0x20] sm:$0xff] (!%p213_p2) }
   0x7   : > { %v615_v16 = vpack.c.bf16 (!%p213_p2), %v379_v15, %v378_v14  ;;  %v381_v18 = vld [vmem:[%s816_s4 + $0x28] sm:$0xff] (!%p213_p2)  ;;  %v382_v20 = vld [vmem:[%s816_s4 + $0x30] sm:$0xff] (!%p213_p2)  ;;  %v383_v21 = vld [vmem:[%s816_s4 + $0x38] sm:$0xff] (!%p213_p2) }
   0x8   : > { %612 = vmatprep.subr.bf16.mxu0 (!%p213_p2), %v611_v13  ;;  %v619_v19 = vpack.c.bf16 (!%p213_p2), %v381_v18, %v380_v17  ;;  %v623_v22 = vpack.c.bf16 (!%p213_p2), %v383_v21, %v382_v20  ;;  %v384_v23 = vld [vmem:[%s816_s4 + $0x40] sm:$0xff] (!%p213_p2)  ;;  %v385_v24 = vld [vmem:[%s816_s4 + $0x48] sm:$0xff] (!%p213_p2)  ;;  %v386_v26 = vld [vmem:[%s816_s4 + $0x50] sm:$0xff] (!%p213_p2) }
   0x9   : > { %614 = vmatpush3.bf16.msra.mxu0 (!%p213_p2), %v611_v13  ;;  %v627_v25 = vpack.c.bf16 (!%p213_p2), %v385_v24, %v384_v23  ;;  %v387_v27 = vld [vmem:[%s816_s4 + $0x58] sm:$0xff] (!%p213_p2)  ;;  %v388_v29 = vld [vmem:[%s816_s4 + $0x60] sm:$0xff] (!%p213_p2)  ;;  %v389_v30 = vld [vmem:[%s816_s4 + $0x68] sm:$0xff] (!%p213_p2) }
   0xa   : > { %616 = vmatprep.subr.bf16.mxu0 (!%p213_p2), %v615_v16  ;;  %v631_v28 = vpack.c.bf16 (!%p213_p2), %v387_v27, %v386_v26  ;;  %v635_v31 = vpack.c.bf16 (!%p213_p2), %v389_v30, %v388_v29  ;;  %v390_v32 = vld [vmem:[%s816_s4 + $0x70] sm:$0xff] (!%p213_p2)  ;;  %v391_v33 = vld [vmem:[%s816_s4 + $0x78] sm:$0xff] (!%p213_p2)  ;;  %v544_v42 = vld [vmem:[%s813_s1] ss:$0 sm:$0xff] (!%p213_p2) }
   0xb   : > { %v639_v34 = vpack.c.bf16 (!%p213_p2), %v391_v33, %v390_v32  ;;  %v545_v44 = vld [vmem:[%s814_s2] ss:$0 sm:$0xff] (!%p213_p2)  ;;  %v547_v52 = vld [vmem:[%s815_s3 + $0x1] ss:$0 sm:$0xff] (!%p213_p2)  ;;  %v548_v53 = vld [vmem:[%s815_s3 + $0x2] ss:$0 sm:$0xff] (!%p213_p2) }
   0xc   : > { %v546_v51 = vld [vmem:[%s815_s3] ss:$0 sm:$0xff] (!%p213_p2)  ;;  %v549_v59 = vld [vmem:[%s815_s3 + $0x3] ss:$0 sm:$0xff] (!%p213_p2)  ;;  %v550_v2 = vld [vmem:[%s815_s3 + $0x4] ss:$0 sm:$0xff] (!%p213_p2) }
   0xd   : > { %s820_s22 = smov (!%p242_p3, %s535_s22), 1  ;;  %618 = vmatpush3.bf16.msra.mxu0 %v615_v16  ;;  %v552_v15 = vld [vmem:[%s815_s3 + $0x6] ss:$0 sm:$0xff] }
   0xe   : > { %s556_s23 = sshll.u32 %s820_s22, 4  ;;  %620 = vmatprep.subr.bf16.mxu0 %v619_v19 }
   0xf   : > { %s246_s26 = scalar_lea.vmem %s812_s0, %s556_s23  ;;  %s251_s15 = scalar_lea.vmem %s818_s6, %s556_s23 }
  0x10   : > { %v716_v0 = vld [vmem:[%s246_s26] sm:$0xff]  ;;  %v719_v1 = vld [vmem:[%s246_s26 + $0x8] sm:$0xff] }
  0x11   : > { %256 = vadd.xlane.f32.xlu0 %v716_v0  ;;  %622 = vmatpush3.bf16.msra.mxu0 %v619_v19 }
  0x12   : > { %624 = vmatprep.subr.bf16.mxu0 %v623_v22 }
  0x15   : > { %258 = vadd.xlane.f32.xlu0 %v719_v1  ;;  %626 = vmatpush3.bf16.msra.mxu0 %v623_v22 }
  0x16   : > { %628 = vmatprep.subr.bf16.mxu0 %v627_v25 }
  0x19   : > { %630 = vmatpush3.bf16.msra.mxu0 %v627_v25 }
  0x1a   : > { %632 = vmatprep.subr.bf16.mxu0 %v631_v28 }
  0x1d   : > { %634 = vmatpush3.bf16.msra.mxu0 %v631_v28 }
  0x1e   : > { %636 = vmatprep.subr.bf16.mxu0 %v635_v31 }
  0x21   : > { %638 = vmatpush3.bf16.msra.mxu0 %v635_v31 }
  0x22   : > { %640 = vmatprep.subr.bf16.mxu0 %v639_v34 }
  0x25   : > { %642 = vmatpush3.bf16.msra.mxu0 %v639_v34  ;;  %v553_v34 = vld [vmem:[%s817_s5] ss:$0 sm:$0xff] }
  0x9e   : > { %v257_v3 = vpop.xlane.xlu0 %256 }
  0x9f   : > { %v261_v4 = vmul.f32 0.0078125, %v257_v3 }
  0xa1   : > { %v263_v5 = vsub.f32 %v716_v0, %v261_v4 }
  0xa2   : > { %v259_v6 = vpop.xlane.xlu0 %258 }
  0xa3   : > { %v262_v7 = vmul.f32 0.0078125, %v259_v6  ;;  %v265_v8 = vmul.f32 %v263_v5, %v263_v5 }
  0xa5   : > { %v264_v9 = vsub.f32 %v719_v1, %v262_v7  ;;  %267 = vadd.xlane.f32.xlu1 %v265_v8 }
  0xa7   : > { %v266_v10 = vmul.f32 %v264_v9, %v264_v9 }
  0xa9   : > { %269 = vadd.xlane.f32.xlu1 %v266_v10  ;;  %v551_v10 = vld [vmem:[%s815_s3 + $0x5] ss:$0 sm:$0xff] }
 0x132   : > { %v268_v35 = vpop.xlane.xlu1 %267 }
 0x133   : > { %v271_v36 = vmul.f32 0.0078125, %v268_v35 }
 0x135   : > { %v273_v37 = vadd.f32 1e-06, %v271_v36 }
 0x136   : > { %v270_v38 = vpop.xlane.xlu1 %269 }
 0x137   : > { %652 = vrsqrt.f32 %v273_v37  ;;  %v272_v39 = vmul.f32 0.0078125, %v270_v38 }
 0x139   : > { %v274_v40 = vadd.f32 1e-06, %v272_v39 }
 0x13b   : > { %654 = vrsqrt.f32 %v274_v40 }
 0x141   : > { %v653_v41 = vpop.eup %652 }
 0x142   : > { %v277_v43 = vmul.f32 %v653_v41, %v263_v5 }
 0x144   : > { %v285_v45 = vmul.f32 %v544_v42, %v277_v43 }
 0x145   : > { %v655_v46 = vpop.eup %654 }
 0x146   : > { %v293_v47 = vadd.f32 %v545_v44, %v285_v45  ;;  %v278_v48 = vmul.f32 %v655_v46, %v264_v9 }
 0x148   : > { %299 = vst [vmem:[#allocation2 + $0x8] sm:$0xff] %v293_v47  ;;  %v286_v49 = vmul.f32 %v544_v42, %v278_v48  ;;  %v339_v7 = vmul.f32 %v549_v59, %v293_v47 }
 0x14a   : > { %v294_v50 = vadd.f32 %v545_v44, %v286_v49 }
 0x14c   : > { %300 = vst [vmem:[#allocation2 + $0x10] sm:$0xff] %v294_v50  ;;  %v340_v20 = vmul.f32 %v549_v59, %v294_v50 }
 0x14f   : > { %v301_v54 = vld [vmem:[#allocation2 + $0x5] sm:$0xff] }
 0x150   : > { %v310_v55 = vld [vmem:[#allocation2 + $0x6] sm:$0xff]  ;;  %v308_v57 = vmul.f32 %v546_v51, %v301_v54 }
 0x151   : > { %v321_v56 = vld [vmem:[#allocation2 + $0x7] sm:$0xff]  ;;  %v317_v58 = vmul.f32 %v547_v52, %v310_v55 }
 0x152   : > { %v328_v61 = vmul.f32 %v548_v53, %v321_v56 }
 0x153   : > { %v319_v60 = vadd.f32 %v317_v58, %v308_v57  ;;  %v302_v62 = vld [vmem:[#allocation2 + $0xd] sm:$0xff] }
 0x154   : > { %v311_v63 = vld [vmem:[#allocation2 + $0xe] sm:$0xff]  ;;  %v309_v3 = vmul.f32 %v546_v51, %v302_v62 }
 0x155   : > { %v318_v4 = vmul.f32 %v547_v52, %v311_v63  ;;  %v322_v5 = vld [vmem:[#allocation2 + $0xf] sm:$0xff]  ;;  %v330_v6 = vadd.f32 %v328_v61, %v319_v60 }
 0x156   : > { %v343_v8 = vld [vmem:[#allocation2 + $0x9] sm:$0xff]  ;;  %v329_v13 = vmul.f32 %v548_v53, %v322_v5  ;;  %v344_v17 = vld [vmem:[#allocation2 + $0x11] sm:$0xff] }
 0x157   : > { %v354_v9 = vld [vmem:[#allocation2 + $0xa] sm:$0xff]  ;;  %v341_v11 = vadd.f32 %v339_v7, %v330_v6  ;;  %v350_v12 = vmul.f32 %v550_v2, %v343_v8  ;;  %v320_v16 = vadd.f32 %v318_v4, %v309_v3  ;;  %v355_v22 = vld [vmem:[#allocation2 + $0x12] sm:$0xff]  ;;  %v351_v25 = vmul.f32 %v550_v2, %v344_v17 }
 0x158   : > { %v365_v14 = vld [vmem:[#allocation2 + $0xb] sm:$0xff]  ;;  %v361_v19 = vmul.f32 %v551_v10, %v354_v9  ;;  %v366_v27 = vld [vmem:[#allocation2 + $0x13] sm:$0xff]  ;;  %v362_v29 = vmul.f32 %v551_v10, %v355_v22 }
 0x159   : > { %v352_v18 = vadd.f32 %v350_v12, %v341_v11  ;;  %v331_v21 = vadd.f32 %v329_v13, %v320_v16  ;;  %v372_v24 = vmul.f32 %v552_v15, %v365_v14  ;;  %v373_v31 = vmul.f32 %v552_v15, %v366_v27 }
 0x15b   : > { %v363_v23 = vadd.f32 %v361_v19, %v352_v18  ;;  %v342_v26 = vadd.f32 %v340_v20, %v331_v21 }
 0x15d   : > { %v374_v28 = vadd.f32 %v372_v24, %v363_v23  ;;  %v353_v30 = vadd.f32 %v351_v25, %v342_v26 }
 0x15f   : > { %608 = vmatprep.mubr.f32.mxu0 %v374_v28  ;;  %v364_v32 = vadd.f32 %v362_v29, %v353_v30 }
 0x161   : > { %v375_v33 = vadd.f32 %v373_v31, %v364_v32 }
 0x163   : > { %609 = vmatmul.mubr.f32.vlgmr.msra.gmra.mrb[0].mxu0 %v375_v33 }
 0x236   : > { %v610_v35 = vpop.f32.mrb[0].mxu0 }
 0x237   : > { %v471_v36 = vadd.f32 %v610_v35, %v553_v34  ;;  %v465_v37 = vpop.f32.mrb[1].mxu0 }
 0x238   : > { %v466_v38 = vadd.f32 %v553_v34, %v465_v37 }
 0x239   : > { %v475_v39 = vmax.f32 %v471_v36, 0.0 }
 0x23a   : > { %v474_v40 = vmax.f32 %v466_v38, 0.0 }
 0x23b   : > { %v477_v41 = vadd.f32 %v475_v39, %v719_v1 }
 0x23c   : > { %v476_v42 = vadd.f32 %v474_v40, %v716_v0 }
 0x23d   : > { %479 = vst [vmem:[%s251_s15 + $0x8] sm:$0xff] %v477_v41 }
 0x23e   : > { %478 = vst [vmem:[%s251_s15] sm:$0xff] %v476_v42 }
 0x23f PF: > { %s16_s21 = sadd.s32 1, %s662_s21  }
 0x240   : > { %p13_p4 = scmp.ge.s32.totalorder %s16_s21, 4  }
 0x242   :  { %15 = sbr.rel (!%p13_p4) target bundleno = 1 (0x1), region = 74 }

// kernel: feature_encoder_forward.9
= control target key start
LH: loop header
LB: loop body
LE: loop exit
PB: predicated region body
PF: predicated region fallthrough
CT: control target
= control target key end

     0   :  { %s2682_s0 = inlined_call_operand.vmem [shape: f32[2,16,128], index: 0, kind: input, shape index: {}]   ;;  %s2683_s1 = inlined_call_operand.vmem [shape: f32[2,1,16], index: 1, kind: input, shape index: {}]   ;;  %s2684_s2 = inlined_call_operand.vmem [shape: f32[1,128], index: 2, kind: input, shape index: {}]   ;;  %s2685_s3 = inlined_call_operand.vmem [shape: f32[1,128], index: 3, kind: input, shape index: {}]   ;;  %s2686_s4 = inlined_call_operand.vmem [shape: f32[128,384], index: 4, kind: input, shape index: {}]   ;;  %s2687_s5 = inlined_call_operand.vmem [shape: f32[1,384], index: 5, kind: input, shape index: {}]   ;;  %s2688_s6 = inlined_call_operand.vmem [shape: f32[1,128], index: 6, kind: input, shape index: {}]   ;;  %s2689_s7 = inlined_call_operand.vmem [shape: f32[1,128], index: 7, kind: input, shape index: {}]   ;;  %s2690_s8 = inlined_call_operand.vmem [shape: f32[128,128], index: 8, kind: input, shape index: {}]   ;;  %s2691_s9 = inlined_call_operand.vmem [shape: f32[1,128], index: 9, kind: input, shape index: {}]   ;;  %s2692_s10 = inlined_call_operand.hbm [shape: f32[2,16,128], index: 10, kind: output, shape index: {}]  }
   0x1   :  { %2693 = sst [smem:[#allocation5_spill]] %s2682_s0 }
   0x2   :  { %15 = vsyncpa [#allocation3], 0 }
   0x3   :  { %17 = vsyncpa [#allocation3 + $0x1], 0  ;;  %s2211_s13 = smov 0   ;;  %s2213_s14 = smov 0  }
   0x4   :  { %s2215_s15 = smov 0   ;;  %s2217_s16 = smov 0  }
   0x5 LB: > { %s2232_s17 = sadd.s32 4294967295, %s2150_s16   ;;  %s1627_s18 = sadd.s32 4294967294, %s2150_s16   ;;  %s2150_s16 = sphi %s2217_s16, %s2706_s16   ;;  %s2146_s15 = sphi %s2215_s15, %s2705_s15   ;;  %s2142_s14 = sphi %s2213_s14, %s2704_s14   ;;  %s2138_s13 = sphi %s2211_s13, %s2703_s13  }
   0x6   : > { %s2236_s19 = sadd.s32 1, %s2150_s16   ;;  %s250_s20 = sadd.s32 1, %s2146_s15 }
   0x7   : > { %s247_s21 = ssub.s32 %s2150_s16, %s2236_s19  ;;  %p260_p0 = scmp.ne.s32.totalorder %s2146_s15, %s2142_s14 }
   0x8   : > { %p248_p1 = scmp.eq.s32.totalorder %s247_s21, 0  ;;  %p261_p2 = scmp.eq.s32.totalorder %s2232_s17, 1 }
   0x9   : > { %p266_p3 = scmp.ne.s32.totalorder %s2142_s14, %s2138_s13  ;;  %p267_p4 = scmp.eq.s32.totalorder %s1627_s18, 1 }
   0xa   : > { %s2247_s22 = scalar_select %p248_p1, %s2146_s15, %s250_s20  }
   0xb   : > { %p2249_p5 = por %p261_p2, %p260_p0  ;;  %p2253_p6 = por %p267_p4, %p266_p3 }
   0xc   : > { %p1630_p7 = scmp.ge.s32.totalorder %s2150_s16, 1  ;;  %p323_p8 = scmp.lt.s32.totalorder %s2150_s16, 3 }
   0xe   : > { %p324_p9 = pnand %p1630_p7, %p323_p8 }
   0xf   : > { %p364_p10 = scmp.lt.s32.totalorder (!%p324_p9), %s2232_s17, 1  ;;  %s2696_s0 = sld [smem:[#allocation5_spill]] (!%p324_p9)  ;;  %v416_v2 = vld [vmem:[%s2686_s4 + $0x8] sm:$0xff] (!%p324_p9)  ;;  %v419_v3 = vld [vmem:[%s2686_s4 + $0x20] sm:$0xff] (!%p324_p9)  ;;  %v418_v6 = vld [vmem:[%s2686_s4 + $0x18] sm:$0xff] (!%p324_p9)  ;;  %vm727_vm12 = vcmask (!%p324_p9), 130048  }
  0x10   : > { %327 = sbr.rel (%p324_p9) target bundleno = 2422 (0x976), region = 60  ;;  %v415_v4 = vld [vmem:[%s2686_s4] sm:$0xff] (!%p324_p9)  ;;  %v1864_v5 = vpack.c.bf16 (!%p324_p9), %v419_v3, %v416_v2  ;;  %v422_v7 = vld [vmem:[%s2686_s4 + $0x38] sm:$0xff] (!%p324_p9)  ;;  %v425_v8 = vld [vmem:[%s2686_s4 + $0x50] sm:$0xff] (!%p324_p9)  ;;  %s1669_s30 = sshll.u32 (!%p324_p9), %s2232_s17, 8 }
  0x11   : > { %v1866_v9 = vpack.c.bf16 (!%p324_p9), %v418_v6, %v415_v4  ;;  %v1868_v10 = vpack.c.bf16 (!%p324_p9), %v425_v8, %v422_v7  ;;  %v417_v11 = vld [vmem:[%s2686_s4 + $0x10] sm:$0xff] (!%p324_p9)  ;;  %v420_v12 = vld [vmem:[%s2686_s4 + $0x28] sm:$0xff] (!%p324_p9)  ;;  %v431_v17 = vld [vmem:[%s2686_s4 + $0x80] sm:$0xff] (!%p324_p9)  ;;  %v2152_v6 = vmov (!%p324_p9), 0.0   ;;  %s2638_s18 = scalar_lea.hbm (!%p324_p9), %s2692_s10, %s1669_s30 }
  0x12   : > { %v421_v13 = vld [vmem:[%s2686_s4 + $0x30] sm:$0xff] (!%p324_p9)  ;;  %1865 = vmatprep.subr.bf16.mxu0 (!%p324_p9), %v1864_v5  ;;  %v1896_v14 = vpack.c.bf16 (!%p324_p9), %v420_v12, %v417_v11  ;;  %v424_v15 = vld [vmem:[%s2686_s4 + $0x48] sm:$0xff] (!%p324_p9)  ;;  %v423_v19 = vld [vmem:[%s2686_s4 + $0x40] sm:$0xff] (!%p324_p9)  ;;  %544 = vmatprep.mubr.f32.mxu0 (!%p324_p9), %v2152_v6 }
  0x13   : > { %v428_v16 = vld [vmem:[%s2686_s4 + $0x68] sm:$0xff] (!%p324_p9)  ;;  %1867 = vmatpush1.bf16.msra.mxu0 (!%p324_p9), %v1866_v9  ;;  %v1870_v18 = vpack.c.bf16 (!%p324_p9), %v424_v15, %v421_v13  ;;  %v426_v20 = vld [vmem:[%s2686_s4 + $0x58] sm:$0xff] (!%p324_p9)  ;;  %v427_v23 = vld [vmem:[%s2686_s4 + $0x60] sm:$0xff] (!%p324_p9) }
  0x14   : > { %1869 = vmatprep.subr.bf16.mxu0 (!%p324_p9), %v1868_v10  ;;  %1897 = vmatprep.subr.bf16.mxu1 (!%p324_p9), %v1896_v14  ;;  %v1872_v21 = vpack.c.bf16 (!%p324_p9), %v431_v17, %v428_v16  ;;  %v1900_v22 = vpack.c.bf16 (!%p324_p9), %v426_v20, %v423_v19  ;;  %v430_v24 = vld [vmem:[%s2686_s4 + $0x78] sm:$0xff] (!%p324_p9)  ;;  %v437_v35 = vld [vmem:[%s2686_s4 + $0xb0] sm:$0xff] (!%p324_p9)  ;;  %v432_v38 = vld [vmem:[%s2686_s4 + $0x88] sm:$0xff] (!%p324_p9) }
  0x15   : > { %1899 = vmatpush3.bf16.msra.mxu1 (!%p324_p9), %v1896_v14  ;;  %v1874_v25 = vpack.c.bf16 (!%p324_p9), %v430_v24, %v427_v23  ;;  %v434_v34 = vld [vmem:[%s2686_s4 + $0x98] sm:$0xff] (!%p324_p9)  ;;  %v429_v36 = vld [vmem:[%s2686_s4 + $0x70] sm:$0xff] (!%p324_p9)  ;;  %v436_v40 = vld [vmem:[%s2686_s4 + $0xa8] sm:$0xff] (!%p324_p9) }
  0x16   : > { %1901 = vmatprep.subr.bf16.mxu1 (!%p324_p9), %v1900_v22  ;;  %v1876_v37 = vpack.c.bf16 (!%p324_p9), %v437_v35, %v434_v34  ;;  %v433_v39 = vld [vmem:[%s2686_s4 + $0x90] sm:$0xff] (!%p324_p9)  ;;  %v1904_v41 = vpack.c.bf16 (!%p324_p9), %v432_v38, %v429_v36  ;;  %v440_v43 = vld [vmem:[%s2686_s4 + $0xc8] sm:$0xff] (!%p324_p9)  ;;  %v443_v44 = vld [vmem:[%s2686_s4 + $0xe0] sm:$0xff] (!%p324_p9) }
  0x17   : > { %s2261_s25 = scalar_select %p364_p10, %s2232_s17, 1  ;;  %1871 = vmatpush1.bf16.msra.mxu0 %v1870_v18  ;;  %v1878_v42 = vpack.c.bf16 %v436_v40, %v433_v39  ;;  %v435_v45 = vld [vmem:[%s2686_s4 + $0xa0] sm:$0xff]  ;;  %v1880_v46 = vpack.c.bf16 %v443_v44, %v440_v43  ;;  %v438_v47 = vld [vmem:[%s2686_s4 + $0xb8] sm:$0xff]  ;;  %v449_v53 = vld [vmem:[%s2686_s4 + $0x110] sm:$0xff]  ;;  %v465_v39 = vlaneseq }
  0x18   : > { %1873 = vmatprep.subr.bf16.mxu0 %v1872_v21  ;;  %v439_v48 = vld [vmem:[%s2686_s4 + $0xc0] sm:$0xff]  ;;  %v442_v49 = vld [vmem:[%s2686_s4 + $0xd8] sm:$0xff]  ;;  %v1908_v50 = vpack.c.bf16 %v438_v47, %v435_v45  ;;  %v441_v54 = vld [vmem:[%s2686_s4 + $0xd0] sm:$0xff] }
  0x19   : > { %s1668_s26 = sshll.u32 %s2261_s25, 4  ;;  %1903 = vmatpush3.bf16.msra.mxu1 %v1900_v22  ;;  %v1882_v51 = vpack.c.bf16 %v442_v49, %v439_v48  ;;  %v446_v52 = vld [vmem:[%s2686_s4 + $0xf8] sm:$0xff]  ;;  %v444_v56 = vld [vmem:[%s2686_s4 + $0xe8] sm:$0xff]  ;;  %v445_v57 = vld [vmem:[%s2686_s4 + $0xf0] sm:$0xff]  ;;  %v466_v40 = vshrl.u32 %v465_v39, 7  ;;  %v2438_v44 = vand.u32 127, %v465_v39  ;;  %s371_s21 = scalar_lea.vmem %s2683_s1, %s2261_s25 }
  0x1a   : > { %s368_s29 = scalar_lea.vmem %s2696_s0, %s1668_s26  ;;  %1905 = vmatprep.subr.bf16.mxu1 %v1904_v41  ;;  %v1884_v55 = vpack.c.bf16 %v449_v53, %v446_v52  ;;  %v448_v58 = vld [vmem:[%s2686_s4 + $0x108] sm:$0xff]  ;;  %v1912_v59 = vpack.c.bf16 %v444_v56, %v441_v54  ;;  %v455_v62 = vld [vmem:[%s2686_s4 + $0x140] sm:$0xff]  ;;  %v450_v3 = vld [vmem:[%s2686_s4 + $0x118] sm:$0xff]  ;;  %s361_s25 = sand.u32 1, %s2142_s14  }
  0x1b   : > { %v2267_v0 = vld [vmem:[%s368_s29] sm:$0xff]  ;;  %v2270_v1 = vld [vmem:[%s368_s29 + $0x8] sm:$0xff]  ;;  %1875 = vmatpush1.bf16.msra.mxu0 %v1874_v25  ;;  %v1886_v60 = vpack.c.bf16 %v448_v58, %v445_v57  ;;  %v454_v5 = vld [vmem:[%s2686_s4 + $0x138] sm:$0xff]  ;;  %v475_v43 = vsub.s32 2, %v466_v40  ;;  %v471_v45 = vsub.s32 1, %v466_v40  ;;  %vm1020_vm0 = vcmp.ge.s32.totalorder %v2438_v44, 64 }
  0x1c   : > { %376 = vadd.xlane.f32.xlu0 %v2267_v0  ;;  %1877 = vmatprep.subr.bf16.mxu0 %v1876_v37  ;;  %v452_v61 = vld [vmem:[%s2686_s4 + $0x128] sm:$0xff]  ;;  %v447_v63 = vld [vmem:[%s2686_s4 + $0x100] sm:$0xff]  ;;  %v458_v9 = vld [vmem:[%s2686_s4 + $0x158] sm:$0xff]  ;;  %vm1021_vm1 = vcmp.lt.s32.totalorder %v2438_v44, 96  ;;  %vm640_vm2 = vcmp.lt.s32.totalorder %v2438_v44, 32  ;;  %vm1209_vm4 = vcmp.ge.s32.totalorder %v2438_v44, 96 }
  0x1d   : > { %1907 = vmatpush3.bf16.msra.mxu1 %v1904_v41  ;;  %v1888_v2 = vpack.c.bf16 %v455_v62, %v452_v61  ;;  %v451_v4 = vld [vmem:[%s2686_s4 + $0x120] sm:$0xff]  ;;  %v1916_v7 = vpack.c.bf16 %v450_v3, %v447_v63  ;;  %v461_v10 = vld [vmem:[%s2686_s4 + $0x170] sm:$0xff]  ;;  %v456_v13 = vld [vmem:[%s2686_s4 + $0x148] sm:$0xff]  ;;  %v467_v41 = vsub.s32 0, %v466_v40  ;;  %vm752_vm7 = vcmp.ge.s32.totalorder %v2438_v44, 32  ;;  %s1631_s26 = sshll.u32 %s361_s25, 4 }
  0x1e   : > { %1909 = vmatprep.subr.bf16.mxu1 %v1908_v50  ;;  %v1890_v8 = vpack.c.bf16 %v454_v5, %v451_v4  ;;  %v453_v11 = vld [vmem:[%s2686_s4 + $0x130] sm:$0xff]  ;;  %v1892_v12 = vpack.c.bf16 %v461_v10, %v458_v9  ;;  %v460_v15 = vld [vmem:[%s2686_s4 + $0x168] sm:$0xff]  ;;  %v459_v18 = vld [vmem:[%s2686_s4 + $0x160] sm:$0xff]  ;;  %vm753_vm8 = vcmp.lt.s32.totalorder %v2438_v44, 64  ;;  %s363_s0 = scalar_lea.vmem [#allocation2], %s1631_s26  ;;  %s2641_s17 = scalar_lea.sflag [#allocation3], %s361_s25 }
  0x1f   : > { %1879 = vmatpush1.bf16.msra.mxu0 %v1878_v42  ;;  %v457_v14 = vld [vmem:[%s2686_s4 + $0x150] sm:$0xff]  ;;  %v1920_v16 = vpack.c.bf16 %v456_v13, %v453_v11  ;;  %v462_v19 = vld [vmem:[%s2686_s4 + $0x178] sm:$0xff]  ;;  %vm2445_vm3 = vmand %vm1020_vm0, %vm1021_vm1  ;;  %s1556_s29 = sshll.u32 %s363_s0, 4  ;;  %s2633_s29 = int_to_ptr.vmem [resolvable:$true] %s1556_s29 }
  0x20   : > { %378 = vadd.xlane.f32.xlu0 %v2270_v1  ;;  %1881 = vmatprep.subr.bf16.mxu0 %v1880_v46  ;;  %v1894_v17 = vpack.c.bf16 %v460_v15, %v457_v14  ;;  %v1924_v20 = vpack.c.bf16 %v462_v19, %v459_v18  ;;  %vm1953_vm5 = vmpackc.low %vm2445_vm3, %vm2445_vm3  ;;  %v634_v4 = vld [vmem:[%s371_s21] sm:$0x1]  ;;  %s2088_s20 = scalar_lea.vmem %s2633_s29, 256  ;;  %s2153_s21 = smov [#allocation2]  }
  0x21   : > { %1911 = vmatpush3.bf16.msra.mxu1 %v1908_v50  ;;  %vm2463_vm6 = vmpackc.low %vm1209_vm4, %vm1209_vm4  ;;  %v635_v5 = vsub.f32 1.0, %v634_v4  ;;  %p2089_p11 = scmp.ne.s32.totalorder %s2633_s29, %s2088_s20  ;;  %s2092_s26 = sshll.u32 %s2153_s21, 4  ;;  %s2093_s26 = int_to_ptr.vmem [resolvable:$false] %s2092_s26 }
  0x22   : > { %1913 = vmatprep.subr.bf16.mxu1 %v1912_v59  ;;  %vm754_vm9 = vmand %vm752_vm7, %vm753_vm8  ;;  %s2094_s27 = scalar_lea.vmem %s2093_s26, 512  ;;  %p2095_p0 = scmp.lt.s32.totalorder %s2633_s29, %s2093_s26 }
  0x23   : > { %1883 = vmatpush1.bf16.msra.mxu0 %v1882_v51  ;;  %vm1937_vm10 = vmpackc.low %vm754_vm9, %vm754_vm9  ;;  %p2090_p12 = pnand %p2089_p11, %p2249_p5  ;;  %p2096_p1 = scmp.lt.s32.totalorder %s2094_s27, %s2088_s20 }
  0x24   : > { %1885 = vmatprep.subr.bf16.mxu0 %v1884_v55  ;;  %vm2488_vm11 = vmpackc.low %vm640_vm2, %vm640_vm2 }
  0x25   : > { %1915 = vmatpush3.bf16.msra.mxu1 %v1912_v59  ;;  %p2091_p13 = pneg %p2090_p12  ;;  %p2097_p2 = por %p2096_p1, %p2095_p0 }
  0x26   : > { %1917 = vmatprep.subr.bf16.mxu1 %v1916_v7 }
  0x27   : > { %1887 = vmatpush1.bf16.msra.mxu0 %v1886_v60  ;;  %p2098_p3 = pnand %p2097_p2, %p2091_p13 }
  0x28   : > { %1889 = vmatprep.subr.bf16.mxu0 %v1888_v2 }
  0x29   : > { %1919 = vmatpush3.bf16.msra.mxu1 %v1916_v7 }
  0x2a   : > { %1921 = vmatprep.subr.bf16.mxu1 %v1920_v16 }
  0x2b   : > { %1891 = vmatpush1.bf16.msra.mxu0 %v1890_v8  ;;  %v636_v8 = vmul.f32 -1e+30, %v635_v5 }
  0x2c   : > { %1893 = vmatprep.subr.bf16.mxu0 %v1892_v12 }
  0x2d   : > { %1923 = vmatpush3.bf16.msra.mxu1 %v1920_v16  ;;  %v2501_v9 = vrot.slane %v636_v8, %v467_v41 }
  0x2e   : > { %1925 = vmatprep.subr.bf16.mxu1 %v1924_v20 }
  0x2f   : > { %1895 = vmatpush1.bf16.msra.mxu0 %v1894_v17 }
  0x31   : > { %1927 = vmatpush3.bf16.msra.mxu1 %v1924_v20 }
  0xa9   : > { %v377_v26 = vpop.xlane.xlu0 %376 }
  0xaa   : > { %v381_v27 = vmul.f32 0.0078125, %v377_v26 }
  0xac   : > { %v2322_v28 = vsub.f32 %v2267_v0, %v381_v27 }
  0xad   : > { %v379_v29 = vpop.xlane.xlu0 %378 }
  0xae   : > { %v382_v30 = vmul.f32 0.0078125, %v379_v29  ;;  %v385_v31 = vmul.f32 %v2322_v28, %v2322_v28  ;;  %v1634_v29 = vld [vmem:[%s2684_s2] ss:$0 sm:$0xff] }
  0xb0   : > { %v2327_v32 = vsub.f32 %v2270_v1, %v382_v30  ;;  %387 = vadd.xlane.f32.xlu1 %v385_v31  ;;  %v1635_v31 = vld [vmem:[%s2685_s3] ss:$0 sm:$0xff] }
  0xb2   : > { %v386_v33 = vmul.f32 %v2327_v32, %v2327_v32 }
  0xb4   : > { %389 = vadd.xlane.f32.xlu1 %v386_v33 }
 0x13d   : > { %v388_v21 = vpop.xlane.xlu1 %387 }
 0x13e   : > { %v391_v22 = vmul.f32 0.0078125, %v388_v21 }
 0x140   : > { %v393_v23 = vadd.f32 1e-06, %v391_v22 }
 0x141   : > { %v390_v24 = vpop.xlane.xlu1 %389 }
 0x142   : > { %2048 = vrsqrt.f32 %v393_v23  ;;  %v392_v25 = vmul.f32 0.0078125, %v390_v24 }
 0x144   : > { %v394_v26 = vadd.f32 1e-06, %v392_v25 }
 0x146   : > { %2050 = vrsqrt.f32 %v394_v26 }
 0x14c   : > { %v2049_v27 = vpop.eup %2048 }
 0x14d   : > { %v397_v30 = vmul.f32 %v2049_v27, %v2322_v28  ;;  %v463_v28 = vld [vmem:[%s2687_s5] sm:$0x7] }
 0x14e   : > { %v468_v42 = vrot.slane %v463_v28, %v467_v41  ;;  %v476_v48 = vrot.slane %v463_v28, %v475_v43  ;;  %v472_v49 = vrot.slane %v463_v28, %v471_v45 }
 0x14f   : > { %v405_v33 = vmul.f32 %v1634_v29, %v397_v30 }
 0x150   : > { %v2051_v34 = vpop.eup %2050 }
 0x151   : > { %v413_v35 = vadd.f32 %v1635_v31, %v405_v33  ;;  %v398_v36 = vmul.f32 %v2051_v34, %v2327_v32 }
 0x153   : > { %545 = vmatmul.mubr.f32.vlgmr.msra.gmra.mrb[0].mxu0 %v413_v35  ;;  %1770 = vmatprep.mubr.f32.mxu1 %v413_v35  ;;  %v406_v37 = vmul.f32 %v1634_v29, %v398_v36 }
 0x154   : > { %550 = vmatprep.mubr.f32.mxu0 %v2152_v6 }
 0x155   : > { %v414_v38 = vadd.f32 %v1635_v31, %v406_v37 }
 0x157   : > { %551 = vmatmul.mubr.f32.gmra.mrb[2].mxu0 %v414_v38  ;;  %1771 = vmatmul.mubr.f32.vlgmr.msra.gmra.mrb[0].mxu1 %v414_v38 }
 0x226   : > { %v546_v32 = vpop.f32.mrb[0].mxu0 }
 0x227   : > { %v547_v46 = vadd.f32 %v546_v32, %v468_v42  ;;  %v548_v47 = vpop.f32.mrb[1].mxu0 }
 0x228   : > { %v549_v57 = vadd.f32 %v548_v47, %v472_v49 }
 0x229   : > { %v2443_v50 = vmul.f32 0.17677669, %v547_v46 }
 0x22a   : > { %v552_v51 = vpop.f32.mrb[2].mxu0  ;;  %v1772_v52 = vpop.f32.mrb[0].mxu1 }
 0x22b   : > { %v629_v54 = vadd.f32 %v1772_v52, %v476_v48  ;;  %v554_v55 = vpop.f32.mrb[3].mxu0  ;;  %v623_v56 = vpop.f32.mrb[1].mxu1  ;;  %1777 = vmatprep.mubr.msk.f32.mxu1 %vm640_vm2, %v2443_v50  ;;  %v553_v63 = vadd.f32 %v552_v51, %v468_v42 }
 0x22c   : > { %v555_v58 = vadd.f32 %v554_v55, %v472_v49  ;;  %v624_v59 = vadd.f32 %v623_v56, %v476_v48 }
 0x22d   : > { %v2477_v2 = vmul.f32 0.17677669, %v553_v63 }
 0x22e   : > { %v2456_v60 = vpack.c.bf16 %v555_v58, %v549_v57  ;;  %v2458_v61 = vpack.c.bf16 %v629_v54, %v624_v59 }
 0x230   : > { %1929 = vmatprep.subr.bf16.mxu1 %v2456_v60  ;;  %1954 = vmatprep.subr.msk.bf16.mxu0 %vm1953_vm5, %v2458_v61 }
 0x231   : > { %1931 = vmatpush3.bf16.xpose.msra.mxu1 %v2456_v60  ;;  %1957 = vmatpush3.bf16.msk.msra.mxu0 %vm1953_vm5, %v2458_v61 }
 0x232   : > { %1933 = vmatprep.subr.bf16.mxu1 %v2456_v60  ;;  %1964 = vmatprep.subr.msk.bf16.mxu0 %vm2463_vm6, %v2458_v61 }
 0x238   : > { %1778 = vmatmul.mubr.msk.f32.vlgmr.msra.gmra.mrb[2].mxu1 %vm640_vm2, %v2477_v2 }
 0x239   : > { %1935 = vmatpush3.bf16.xpose.msra.mxu1 %v2456_v60  ;;  %1784 = vmatprep.mubr.msk.f32.mxu1 %vm754_vm9, %v2443_v50 }
 0x23a   : > { %1938 = vmatprep.subr.msk.bf16.mxu1 %vm1937_vm10, %v2458_v61 }
 0x240   : > { %1785 = vmatmul.mubr.msk.f32.vlgmr.msra.gmra.mrb[4].mxu1 %vm754_vm9, %v2477_v2 }
 0x241   : > { %1941 = vmatpush3.bf16.msk.msra.mxu1 %vm1937_vm10, %v2458_v61 }
 0x242   : > { %1944 = vmatprep.subr.msk.bf16.mxu1 %vm2488_vm11, %v2458_v61 }
 0x30b   : > { %v1779_v6 = vpop.f32.mrb[2].mxu1 }
 0x30c   : > { %v718_v7 = vpop.f32.mrb[3].mxu1  ;;  %v724_v14 = vadd.f32 %v1779_v6, %v2501_v9 }
 0x30d   : > { %v719_v16 = vadd.f32 %v718_v7, %v2501_v9 }
 0x30e   : > { %v731_v18 = vsel %vm727_vm12, %v724_v14, -inf }
 0x30f   : > { %v728_v19 = vsel %vm727_vm12, %v719_v16, -inf }
 0x313   : > { %v1786_v10 = vpop.f32.mrb[4].mxu1 }
 0x314   : > { %v831_v11 = vadd.f32 %v1786_v10, %v2501_v9  ;;  %v825_v12 = vpop.f32.mrb[5].mxu1 }
 0x315   : > { %v826_v13 = vadd.f32 %v825_v12, %v2501_v9 }
 0x316   : > { %v837_v15 = vsel %vm727_vm12, %v831_v11, -inf }
 0x317   : > { %838 = vmax.xlane.f32.xlu1 %v837_v15  ;;  %v834_v17 = vsel %vm727_vm12, %v826_v13, -inf }
 0x318   : > { %835 = vmax.xlane.f32.xlu0 %v834_v17 }
 0x31b   : > { %732 = vmax.xlane.f32.xlu1 %v731_v18 }
 0x31c   : > { %729 = vmax.xlane.f32.xlu0 %v728_v19 }
 0x3a4   : > { %v839_v20 = vpop.xlane.xlu1 %838 }
 0x3a5   : > { %v841_v21 = vsub.f32 %v831_v11, %v839_v20  ;;  %v836_v22 = vpop.xlane.xlu0 %835 }
 0x3a6   : > { %v840_v23 = vsub.f32 %v826_v13, %v836_v22 }
 0x3a7   : > { %v844_v24 = vmul.f32 1.442695, %v841_v21 }
 0x3a8   : > { %v842_v25 = vmul.f32 1.442695, %v840_v23  ;;  %v733_v26 = vpop.xlane.xlu1 %732 }
 0x3a9   : > { %2052 = vpow2.f32 %v844_v24  ;;  %v735_v27 = vsub.f32 %v724_v14, %v733_v26  ;;  %v730_v29 = vpop.xlane.xlu0 %729 }
 0x3aa   : > { %2054 = vpow2.f32 %v842_v25  ;;  %v734_v30 = vsub.f32 %v719_v16, %v730_v29 }
 0x3ab   : > { %v738_v31 = vmul.f32 1.442695, %v735_v27 }
 0x3ac   : > { %v736_v33 = vmul.f32 1.442695, %v734_v30 }
 0x3ad   : > { %2056 = vpow2.f32 %v738_v31 }
 0x3ae   : > { %2058 = vpow2.f32 %v736_v33 }
 0x3b3   : > { %v2053_v34 = vpop.eup %2052 }
 0x3b4   : > { %v2055_v35 = vpop.eup %2054  ;;  %v849_v36 = vsel %vm727_vm12, %v2053_v34, 0.0 }
 0x3b5   : > { %850 = vadd.xlane.f32.xlu1 %v849_v36  ;;  %v846_v37 = vsel %vm727_vm12, %v2055_v35, 0.0 }
 0x3b6   : > { %847 = vadd.xlane.f32.xlu0 %v846_v37 }
 0x3b7   : > { %v2057_v38 = vpop.eup %2056 }
 0x3b8   : > { %v2059_v39 = vpop.eup %2058  ;;  %v743_v40 = vsel %vm727_vm12, %v2057_v38, 0.0 }
 0x3b9   : > { %744 = vadd.xlane.f32.xlu1 %v743_v40  ;;  %v740_v41 = vsel %vm727_vm12, %v2059_v39, 0.0 }
 0x3ba   : > { %741 = vadd.xlane.f32.xlu0 %v740_v41 }
 0x442   : > { %v851_v28 = vpop.xlane.xlu1 %850 }
 0x443   : > { %2060 = vrcp.f32 %v851_v28  ;;  %v848_v42 = vpop.xlane.xlu0 %847 }
 0x444   : > { %2062 = vrcp.f32 %v848_v42 }
 0x446   : > { %v745_v45 = vpop.xlane.xlu1 %744 }
 0x447   : > { %v742_v43 = vpop.xlane.xlu0 %741 }
 0x448   : > { %2064 = vrcp.f32 %v742_v43 }
 0x449   : > { %2066 = vrcp.f32 %v745_v45  ;;  %v1441_v45 = vld [vmem:[%s2690_s8 + $0x8] sm:$0xff] }
 0x44d   : > { %v2061_v32 = vpop.eup %2060 }
 0x44e   : > { %v2063_v46 = vpop.eup %2062  ;;  %v855_v48 = vmul.f32 %v2061_v32, %v2053_v34 }
 0x44f   : > { %v854_v47 = vmul.f32 %v2063_v46, %v2055_v35 }
 0x451   : > { %1791 = vmatprep.mubr.msk.f32.mxu1 %vm727_vm12, %v854_v47  ;;  %v1444_v47 = vld [vmem:[%s2690_s8 + $0x20] sm:$0xff] }
 0x452   : > { %v2065_v49 = vpop.eup %2064  ;;  %1792 = vmatmul.mubr.msk.f32.vlgmr.msra.gmra.mrb[6].mxu1 %vm727_vm12, %v855_v48  ;;  %v1445_v48 = vld [vmem:[%s2690_s8 + $0x28] sm:$0xff] }
 0x453   : > { %1947 = vmatpush3.bf16.msk.msra.mxu1 %vm2488_vm11, %v2458_v61  ;;  %v748_v51 = vmul.f32 %v2065_v49, %v2059_v39  ;;  %v2067_v52 = vpop.eup %2066  ;;  %v1976_v49 = vpack.c.bf16 %v1445_v48, %v1444_v47 }
 0x454   : > { %1949 = vmatprep.subr.bf16.mxu1 %v2456_v60  ;;  %v749_v54 = vmul.f32 %v2067_v52, %v2057_v38 }
 0x455   : > { %1798 = vmatprep.mubr.msk.f32.mxu1 %vm727_vm12, %v748_v51 }
 0x45a   : > { %1799 = vmatmul.mubr.msk.f32.vlgmr.msra.gmra.mrb[6].mxu1 %vm727_vm12, %v749_v54 }
 0x45b   : > { %1805 = vmatprep.mubr.msk.f32.mxu1 %vm2445_vm3, %v2443_v50 }
 0x45c   : > { %1951 = vmatpush3.bf16.xpose.msra.mxu1 %v2456_v60 }
 0x45d   : > { %1959 = vmatprep.subr.bf16.mxu1 %v2456_v60 }
 0x463   : > { %1806 = vmatmul.mubr.msk.f32.vlgmr.msra.gmra.mrb[8].mxu1 %vm2445_vm3, %v2477_v2 }
 0x464   : > { %1961 = vmatpush3.bf16.xpose.msra.mxu1 %v2456_v60  ;;  %1819 = vmatprep.mubr.msk.f32.mxu1 %vm1209_vm4, %v2443_v50 }
 0x46b   : > { %1820 = vmatmul.mubr.msk.f32.vlgmr.msra.gmra.mrb[10].mxu1 %vm1209_vm4, %v2477_v2 }
 0x52d   : > { %v2538_v55 = vpop.f32.mrb[6].mxu1 }
 0x52e   : > { %v2540_v56 = vpop.f32.mrb[7].mxu1 }
 0x536   : > { %v1807_v57 = vpop.f32.mrb[8].mxu1 }
 0x537   : > { %v1099_v58 = vadd.f32 %v1807_v57, %v2501_v9  ;;  %v1093_v59 = vpop.f32.mrb[9].mxu1 }
 0x538   : > { %v1094_v53 = vadd.f32 %v1093_v59, %v2501_v9 }
 0x539   : > { %v1105_v60 = vsel %vm727_vm12, %v1099_v58, -inf }
 0x53a   : > { %1106 = vmax.xlane.f32.xlu1 %v1105_v60  ;;  %v1102_v63 = vsel %vm727_vm12, %v1094_v53, -inf  ;;  %v1447_v60 = vld [vmem:[%s2690_s8 + $0x38] sm:$0xff] }
 0x53b   : > { %1103 = vmax.xlane.f32.xlu0 %v1102_v63 }
 0x53e   : > { %v1821_v50 = vpop.f32.mrb[10].mxu1 }
 0x53f   : > { %v1288_v44 = vadd.f32 %v1821_v50, %v2501_v9  ;;  %v1282_v2 = vpop.f32.mrb[11].mxu1  ;;  %v1448_v50 = vld [vmem:[%s2690_s8 + $0x40] sm:$0xff] }
 0x540   : > { %v1283_v3 = vadd.f32 %v1282_v2, %v2501_v9  ;;  %v1450_v2 = vld [vmem:[%s2690_s8 + $0x50] sm:$0xff] }
 0x541   : > { %v1294_v4 = vsel %vm727_vm12, %v1288_v44, -inf }
 0x542   : > { %1295 = vmax.xlane.f32.xlu1 %v1294_v4  ;;  %v1291_v5 = vsel %vm727_vm12, %v1283_v3, -inf  ;;  %v1451_v4 = vld [vmem:[%s2690_s8 + $0x58] sm:$0xff] }
 0x543   : > { %1292 = vmax.xlane.f32.xlu0 %v1291_v5  ;;  %v1988_v5 = vpack.c.bf16 %v1451_v4, %v1450_v2 }
 0x5c7   : > { %v1107_v6 = vpop.xlane.xlu1 %1106 }
 0x5c8   : > { %v1109_v7 = vsub.f32 %v1099_v58, %v1107_v6  ;;  %v1104_v8 = vpop.xlane.xlu0 %1103  ;;  %v1452_v6 = vld [vmem:[%s2690_s8 + $0x60] sm:$0xff] }
 0x5c9   : > { %v1108_v10 = vsub.f32 %v1094_v53, %v1104_v8  ;;  %v1446_v53 = vld [vmem:[%s2690_s8 + $0x30] sm:$0xff] }
 0x5ca   : > { %v1112_v11 = vmul.f32 1.442695, %v1109_v7  ;;  %v1980_v63 = vpack.c.bf16 %v1447_v60, %v1446_v53  ;;  %v1453_v7 = vld [vmem:[%s2690_s8 + $0x68] sm:$0xff] }
 0x5cb   : > { %v1110_v12 = vmul.f32 1.442695, %v1108_v10  ;;  %v1992_v8 = vpack.c.bf16 %v1453_v7, %v1452_v6  ;;  %v1454_v10 = vld [vmem:[%s2690_s8 + $0x70] sm:$0xff] }
 0x5cc   : > { %2068 = vpow2.f32 %v1112_v11  ;;  %v1455_v11 = vld [vmem:[%s2690_s8 + $0x78] sm:$0xff] }
 0x5cd   : > { %2070 = vpow2.f32 %v1110_v12  ;;  %v1996_v12 = vpack.c.bf16 %v1455_v11, %v1454_v10 }
 0x5cf   : > { %v1296_v13 = vpop.xlane.xlu1 %1295 }
 0x5d0   : > { %v1298_v14 = vsub.f32 %v1288_v44, %v1296_v13  ;;  %v1293_v15 = vpop.xlane.xlu0 %1292  ;;  %v1449_v44 = vld [vmem:[%s2690_s8 + $0x48] sm:$0xff] }
 0x5d1   : > { %v1297_v16 = vsub.f32 %v1283_v3, %v1293_v15  ;;  %v1984_v3 = vpack.c.bf16 %v1449_v44, %v1448_v50 }
 0x5d2   : > { %v1301_v17 = vmul.f32 1.442695, %v1298_v14 }
 0x5d3   : > { %v1299_v9 = vmul.f32 1.442695, %v1297_v16 }
 0x5d4   : > { %2072 = vpow2.f32 %v1301_v17 }
 0x5d5   : > { %2074 = vpow2.f32 %v1299_v9 }
 0x5d6   : > { %v2069_v18 = vpop.eup %2068 }
 0x5d7   : > { %v2071_v19 = vpop.eup %2070  ;;  %v1117_v20 = vsel %vm727_vm12, %v2069_v18, 0.0 }
 0x5d8   : > { %1118 = vadd.xlane.f32.xlu1 %v1117_v20  ;;  %v1114_v21 = vsel %vm727_vm12, %v2071_v19, 0.0 }
 0x5d9   : > { %1115 = vadd.xlane.f32.xlu0 %v1114_v21 }
 0x5de   : > { %v2073_v22 = vpop.eup %2072 }
 0x5df   : > { %v2075_v23 = vpop.eup %2074  ;;  %v1306_v24 = vsel %vm727_vm12, %v2073_v22, 0.0 }
 0x5e0   : > { %1307 = vadd.xlane.f32.xlu1 %v1306_v24  ;;  %v1303_v25 = vsel %vm727_vm12, %v2075_v23, 0.0 }
 0x5e1   : > { %1304 = vadd.xlane.f32.xlu0 %v1303_v25 }
 0x665   : > { %v1119_v26 = vpop.xlane.xlu1 %1118 }
 0x666   : > { %2076 = vrcp.f32 %v1119_v26  ;;  %v1116_v27 = vpop.xlane.xlu0 %1115 }
 0x667   : > { %2078 = vrcp.f32 %v1116_v27 }
 0x66d   : > { %v1308_v29 = vpop.xlane.xlu1 %1307 }
 0x66e   : > { %2080 = vrcp.f32 %v1308_v29  ;;  %v1305_v30 = vpop.xlane.xlu0 %1304  ;;  %v1662_v29 = vld [vmem:[%s2691_s9] ss:$0 sm:$0xff] }
 0x66f   : > { %2082 = vrcp.f32 %v1305_v30 }
 0x670   : > { %v2077_v31 = vpop.eup %2076 }
 0x671   : > { %v2079_v33 = vpop.eup %2078  ;;  %v1123_v35 = vmul.f32 %v2077_v31, %v2069_v18 }
 0x672   : > { %v1122_v34 = vmul.f32 %v2079_v33, %v2071_v19  ;;  %v1660_v19 = vld [vmem:[%s2688_s6] ss:$0 sm:$0xff] }
 0x674   : > { %1812 = vmatprep.mubr.msk.f32.mxu0 %vm727_vm12, %v1122_v34 }
 0x675   : > { %1813 = vmatmul.mubr.msk.f32.vlgmr.msra.gmra.mrb[4].mxu0 %vm727_vm12, %v1123_v35 }
 0x676   : > { %1967 = vmatpush3.bf16.msk.msra.mxu0 %vm2463_vm6, %v2458_v61  ;;  %v1440_v61 = vld [vmem:[%s2690_s8] sm:$0xff] }
 0x677   : > { %v1968_v32 = vpack.c.bf16 %v1441_v45, %v1440_v61 }
 0x678   : > { %v2081_v36 = vpop.eup %2080 }
 0x679   : > { %v2083_v37 = vpop.eup %2082  ;;  %v1312_v39 = vmul.f32 %v2081_v36, %v2073_v22  ;;  %1969 = vmatprep.subr.bf16.mxu0 %v1968_v32 }
 0x67a   : > { %v1311_v38 = vmul.f32 %v2083_v37, %v2075_v23  ;;  %v1661_v23 = vld [vmem:[%s2689_s7] ss:$0 sm:$0xff] }
 0x67c   : > { %1826 = vmatprep.mubr.msk.f32.mxu0 %vm727_vm12, %v1311_v38 }
 0x67d   : > { %1827 = vmatmul.mubr.msk.f32.vlgmr.msra.gmra.mrb[4].mxu0 %vm727_vm12, %v1312_v39 }
 0x67e   : > { %1971 = vmatpush3.bf16.msra.mxu0 %v1968_v32 }
 0x750   : > { %v1828_v40 = vpop.f32.mrb[4].mxu0 }
 0x751   : > { %v2000_v41 = vadd.f32 %v1828_v40, %v2538_v55  ;;  %v1387_v28 = vpop.f32.mrb[5].mxu0 }
 0x752   : > { %v2001_v42 = vadd.f32 %v1387_v28, %v2540_v56 }
 0x753   : > { %v2564_v43 = vadd.f32 %v2000_v41, %v2270_v1  ;;  %v1442_v1 = vld [vmem:[%s2690_s8 + $0x10] sm:$0xff] }
 0x754   : > { %v2567_v62 = vadd.f32 %v2001_v42, %v2267_v0  ;;  %v1443_v0 = vld [vmem:[%s2690_s8 + $0x18] sm:$0xff] }
 0x755   : > { %1404 = vadd.xlane.f32.xlu1 %v2564_v43  ;;  %v1972_v46 = vpack.c.bf16 %v1443_v0, %v1442_v1 }
 0x756   : > { %1402 = vadd.xlane.f32.xlu0 %v2567_v62 }
 0x757   : > { %1973 = vmatprep.subr.bf16.mxu0 %v1972_v46 }
 0x758   : > { %1975 = vmatpush3.bf16.msra.mxu0 %v1972_v46 }
 0x759   : > { %1977 = vmatprep.subr.bf16.mxu0 %v1976_v49 }
 0x75c   : > { %1979 = vmatpush3.bf16.msra.mxu0 %v1976_v49 }
 0x75d   : > { %1981 = vmatprep.subr.bf16.mxu0 %v1980_v63 }
 0x760   : > { %1983 = vmatpush3.bf16.msra.mxu0 %v1980_v63 }
 0x761   : > { %1985 = vmatprep.subr.bf16.mxu0 %v1984_v3 }
 0x764   : > { %1987 = vmatpush3.bf16.msra.mxu0 %v1984_v3 }
 0x765   : > { %1989 = vmatprep.subr.bf16.mxu0 %v1988_v5 }
 0x768   : > { %1991 = vmatpush3.bf16.msra.mxu0 %v1988_v5 }
 0x769   : > { %1993 = vmatprep.subr.bf16.mxu0 %v1992_v8 }
 0x76c   : > { %1995 = vmatpush3.bf16.msra.mxu0 %v1992_v8 }
 0x76d   : > { %1997 = vmatprep.subr.bf16.mxu0 %v1996_v12 }
 0x770   : > { %1999 = vmatpush3.bf16.msra.mxu0 %v1996_v12 }
 0x7e2   : > { %v1405_v51 = vpop.xlane.xlu1 %1404 }
 0x7e3   : > { %v1407_v52 = vmul.f32 0.0078125, %v1405_v51  ;;  %v1403_v54 = vpop.xlane.xlu0 %1402 }
 0x7e4   : > { %v1406_v55 = vmul.f32 0.0078125, %v1403_v54 }
 0x7e5   : > { %v1409_v56 = vsub.f32 %v2564_v43, %v1407_v52 }
 0x7e6   : > { %v1408_v57 = vsub.f32 %v2567_v62, %v1406_v55 }
 0x7e7   : > { %v1411_v58 = vmul.f32 %v1409_v56, %v1409_v56 }
 0x7e8   : > { %v1410_v59 = vmul.f32 %v1408_v57, %v1408_v57 }
 0x7e9   : > { %1414 = vadd.xlane.f32.xlu1 %v1411_v58 }
 0x7ea   : > { %1412 = vadd.xlane.f32.xlu0 %v1410_v59 }
 0x876   : > { %v1415_v13 = vpop.xlane.xlu1 %1414 }
 0x877   : > { %v1417_v14 = vmul.f32 0.0078125, %v1415_v13  ;;  %v1413_v15 = vpop.xlane.xlu0 %1412 }
 0x878   : > { %v1416_v16 = vmul.f32 0.0078125, %v1413_v15 }
 0x879   : > { %v1419_v17 = vadd.f32 1e-06, %v1417_v14 }
 0x87a   : > { %v1418_v9 = vadd.f32 1e-06, %v1416_v16 }
 0x87b   : > { %2084 = vrsqrt.f32 %v1419_v17 }
 0x87c   : > { %2086 = vrsqrt.f32 %v1418_v9 }
 0x885   : > { %v2085_v18 = vpop.eup %2084 }
 0x886   : > { %v2087_v20 = vpop.eup %2086  ;;  %v1423_v21 = vmul.f32 %v2085_v18, %v1409_v56 }
 0x887   : > { %v1422_v22 = vmul.f32 %v2087_v20, %v1408_v57 }
 0x888   : > { %v1431_v24 = vmul.f32 %v1660_v19, %v1423_v21 }
 0x889   : > { %v1430_v25 = vmul.f32 %v1660_v19, %v1422_v22 }
 0x88a   : > { %v1439_v27 = vadd.f32 %v1661_v23, %v1431_v24 }
 0x88b   : > { %v1438_v26 = vadd.f32 %v1661_v23, %v1430_v25 }
 0x88d   : > { %1861 = vmatprep.mubr.f32.mxu0 %v1438_v26 }
 0x88e   : > { %1862 = vmatmul.mubr.f32.vlgmr.msra.gmra.mrb[6].mxu0 %v1439_v27 }
 0x961   : > { %v1863_v30 = vpop.f32.mrb[6].mxu0 }
 0x962   : > { %v1535_v31 = vadd.f32 %v1863_v30, %v1662_v29  ;;  %v1529_v33 = vpop.f32.mrb[7].mxu0 }
 0x963   : > { %v1530_v34 = vadd.f32 %v1662_v29, %v1529_v33 }
 0x964   : > { %v1539_v35 = vadd.f32 %v1535_v31, %v2564_v43 }
 0x965   : > { %v1538_v36 = vadd.f32 %v1530_v34, %v2567_v62 }
 0x966   : > { %1541 = vst [vmem:[%s363_s0 + $0x8] sm:$0xff] %v1539_v35 }
 0x967   : > { %1540 = vst [vmem:[%s363_s0] sm:$0xff] %v1538_v36 }
 0x968   : > { %2101 = shalt.err (!%p2098_p3)
}
 0x969   : > { %s2102_s25 = scalar_lea.hbm %s2638_s18, 256  ;;  %s2106_s30 = scalar_lea.hbm %s2692_s10, 512 }
 0x96a   : > { %p2103_p4 = scmp.ne.s32.totalorder %s2638_s18, %s2102_s25  ;;  %p2107_p9 = scmp.lt.u32.totalorder %s2638_s18, %s2692_s10 }
 0x96b   : > { %p2108_p10 = scmp.lt.u32.totalorder %s2106_s30, %s2102_s25  ;;  %p2110_p12 = scmp.lt.u32.totalorder %s2102_s25, %s2638_s18 }
 0x96c   : > { %p2104_p7 = pnand %p2103_p4, %p2249_p5 }
 0x96d   : > { %p2109_p11 = por %p2108_p10, %p2107_p9 }
 0x96e   : > { %p2105_p8 = pneg %p2104_p7 }
 0x96f   : > { %p2111_p13 = por %p2110_p12, %p2109_p11 }
 0x971   : > { %p2112_p0 = pnand %p2111_p13, %p2105_p8 }
 0x973   : > { %2115 = shalt.err (!%p2112_p0)
}
 0x974   : > { %s2154_s20 = smov 128   ;;  %s2155_s21 = smov 8  }
 0x975   : > { %2006 = dma.vmem_to_hbm [thread:$0]  (%p2249_p5), %s2633_s29, 256, %s2638_s18, %s2641_s17, %s2154_s20, %s2154_s20, %s2155_s21  }
 0x976 PF: > { %p2012_p1 = scmp.ge.s32.totalorder %s2150_s16, 2  ;;  %s1571_s26 = sand.u32 1, %s2138_s13  }
 0x977   : > { %s1572_s27 = scalar_lea.sflag [#allocation3], %s1571_s26 }
 0x978   : > { %p2009_p2 = pnand %p2012_p1, %p2253_p6 }
 0x97a   : > { %2133 = dma.done.wait (!%p2009_p2), %s1572_s27, 256  }
 0x97b   : > { %2135 = vsyncadd (!%p2009_p2), %s1572_s27, 4294967040  ;;  %p20_p3 = scmp.ge.s32.totalorder %s2236_s19, 4   ;;  %s2703_s13 = smov %s2142_s14 }
 0x97c   : > { %s2704_s14 = smov %s2146_s15  ;;  %s2705_s15 = smov %s2247_s22 }
 0x97d   : > { %s2706_s16 = smov %s2236_s19  ;;  %22 = sbr.rel (!%p20_p3) target bundleno = 5 (0x5), region = 98 }
 0x984   :  { %1577 = vsyncpa [#allocation3], 1 }
 0x985   :  { %1579 = vsyncpa [#allocation3 + $0x1], 1 }

</bundles_post_ra>
